<compile_context>
chip_gen: v7x
topology: tpu7x:2x2x1
jax: 0.10.0
libtpu: 0.0.40
codegen_flags: <defaults>
</compile_context>

<pallas_src>
import math
import functools

import jax
import jax.numpy as jnp
from jax.experimental import pallas as pl
from jax.experimental.pallas import tpu as pltpu


# Above the v5e/v6e scoped defaults, within physical VMEM on every generation.
_VMEM_LIMIT_BYTES = 64 * 1024 * 1024


# ----------------------------------------------------------------------------
# In-kernel math helpers (traced inside Pallas kernels)
# ----------------------------------------------------------------------------
def _layernorm(x, w, b, eps=1e-5):
    mu = jnp.mean(x, axis=-1, keepdims=True)
    var = jnp.mean(jnp.square(x - mu), axis=-1, keepdims=True)
    return (x - mu) * jax.lax.rsqrt(var + eps) * w + b


def _erf_poly(x):
    # Abramowitz & Stegun 7.1.26 polynomial erf, |err| ~ 1.5e-7; exp/mul/add only.
    a1, a2, a3, a4, a5 = 0.254829592, -0.284496736, 1.421413741, -1.453152027, 1.061405429
    p = 0.3275911
    sign = jnp.where(x >= 0.0, 1.0, -1.0)
    ax = jnp.abs(x)
    t = pl.reciprocal(1.0 + p * ax, approx=True)        # EUP slot, effectively free
    poly = ((((a5 * t + a4) * t + a3) * t + a2) * t + a1) * t
    return sign * (1.0 - poly * jnp.exp(-ax * ax))


def _gelu_exact(x):
    # matches torch.nn.GELU() (erf formulation)
    return 0.5 * x * (1.0 + _erf_poly(x * 0.7071067811865476))


# ----------------------------------------------------------------------------
# Pallas kernels
# ----------------------------------------------------------------------------
def _block_kernel(B, T, n_head, joined_dim,
                  x_ref,
                  ln1w_ref, ln1b_ref, wqkv_ref, bqkv_ref, wp_ref, bp_ref,
                  ln2w_ref, ln2b_ref, w1_ref, b1_ref, w2_ref, b2_ref,
                  out_ref, y_scr):
    """One transformer Block over the whole flattened batch (B*T, C):
    ln1 -> causal MHA -> residual -> ln2 -> MLP(GELU) -> residual."""
    x = x_ref[...]                                    # (B*T, C) f32
    C = x.shape[-1]
    H = n_head
    D = C // H

    # ---- attention: fused QKV projection (bf16 operands, f32 accumulate) ----
    h = _layernorm(x, ln1w_ref[...], ln1b_ref[...]).astype(jnp.bfloat16)
    qkv = jnp.dot(h, wqkv_ref[...], preferred_element_type=jnp.float32) + bqkv_ref[...]
    q, k, v = qkv[:, :C], qkv[:, C:2 * C], qkv[:, 2 * C:]

    # causal + "joined column" mask as an additive bias, generated in-kernel
    # (computed once per layer call; shared across batch elements / heads).
    rows = jax.lax.broadcasted_iota(jnp.int32, (T, T), 0)
    cols = jax.lax.broadcasted_iota(jnp.int32, (T, T), 1)
    keep = cols <= rows
    for c in range(joined_dim - 1, T, joined_dim):    # these columns masked everywhere
        keep = jnp.logical_and(keep, cols != c)
    bias = jnp.where(keep, jnp.float32(0.0), jnp.float32(-1e30))

    scale = 1.0 / math.sqrt(D)
    for b in range(B):                                # static unroll over batch elements
        r0 = b * T
        for hd in range(H):                           # static unroll over heads
            c0 = hd * D
            qh = q[r0:r0 + T, c0:c0 + D].astype(jnp.bfloat16)
            kh = k[r0:r0 + T, c0:c0 + D].astype(jnp.bfloat16)
            vh = v[r0:r0 + T, c0:c0 + D].astype(jnp.bfloat16)
            att = jax.lax.dot_general(qh, kh, (((1,), (1,)), ((), ())),
                                      preferred_element_type=jnp.float32)
            att = att * scale + bias
            att = att - jnp.max(att, axis=-1, keepdims=True)
            e = jnp.exp(att)
            p = e * pl.reciprocal(jnp.sum(e, axis=-1, keepdims=True), approx=True)
            yh = jnp.dot(p.astype(jnp.bfloat16), vh, preferred_element_type=jnp.float32)
            y_scr[r0:r0 + T, c0:c0 + D] = yh          # no concat: write head slab to scratch
    y = y_scr[...].astype(jnp.bfloat16)
    y = jnp.dot(y, wp_ref[...], preferred_element_type=jnp.float32) + bp_ref[...]
    x = x + y

    # ---- MLP ----
    h2 = _layernorm(x, ln2w_ref[...], ln2b_ref[...]).astype(jnp.bfloat16)
    m = jnp.dot(h2, w1_ref[...], preferred_element_type=jnp.float32) + b1_ref[...]
    m = _gelu_exact(m).astype(jnp.bfloat16)
    m = jnp.dot(m, w2_ref[...], preferred_element_type=jnp.float32) + b2_ref[...]
    out_ref[...] = x + m


def _head_kernel(Td, x_ref, lnfw_ref, lnfb_ref, w_ref, out_ref):
    """Final LayerNorm fused with the EinLinear head (bias=False).
    x_ref: (Bp, Td, C) f32; w_ref: (Td, O, C) bf16; out_ref: (Bp, Td, O) f32."""
    lnw = lnfw_ref[...]
    lnb = lnfb_ref[...]
    for e in range(Td):                               # static unroll over transition slots
        he = _layernorm(x_ref[:, e, :], lnw, lnb).astype(jnp.bfloat16)
        out_ref[:, e, :] = jax.lax.dot_general(
            he, w_ref[e], (((1,), (1,)), ((), ())),
            preferred_element_type=jnp.float32)


# ----------------------------------------------------------------------------
# Pallas wrappers
# ----------------------------------------------------------------------------
def _full_spec(a):
    return pl.BlockSpec(a.shape, lambda i, nd=a.ndim: (0,) * nd)


_BLOCK_PARAM_KEYS = ('ln1_w', 'ln1_b', 'wqkv', 'bqkv', 'wp', 'bp',
                     'ln2_w', 'ln2_b', 'w1', 'b1', 'w2', 'b2')


def run_block(x_flat, blk, n_head, B, T, joined_dim):
    BT, C = x_flat.shape
    params = [blk[key] for key in _BLOCK_PARAM_KEYS]
    io_spec = pl.BlockSpec((BT, C), lambda i: (0, 0))
    return pl.pallas_call(
        functools.partial(_block_kernel, B, T, n_head, joined_dim),
        out_shape=jax.ShapeDtypeStruct((BT, C), x_flat.dtype),
        grid=(1,),
        in_specs=[io_spec] + [_full_spec(a) for a in params],
        out_specs=io_spec,
        scratch_shapes=[pltpu.VMEM((BT, C), jnp.float32)],
        input_output_aliases={0: 0},                  # residual stream updated in place
        compiler_params=pltpu.CompilerParams(
            dimension_semantics=("arbitrary",),
            vmem_limit_bytes=_VMEM_LIMIT_BYTES),
    )(x_flat, *params)


def run_head(x_pad, lnf_w, lnf_b, head_w):
    Bp, Td, C = x_pad.shape
    O = head_w.shape[1]
    return pl.pallas_call(
        functools.partial(_head_kernel, Td),
        out_shape=jax.ShapeDtypeStruct((Bp, Td, O), jnp.float32),
        grid=(1,),
        in_specs=[_full_spec(x_pad), _full_spec(lnf_w),
                  _full_spec(lnf_b), _full_spec(head_w)],
        out_specs=pl.BlockSpec((Bp, Td, O), lambda i: (0, 0, 0)),
        compiler_params=pltpu.CompilerParams(
            dimension_semantics=("arbitrary",),
            vmem_limit_bytes=_VMEM_LIMIT_BYTES),
    )(x_pad, lnf_w, lnf_b, head_w)


# ----------------------------------------------------------------------------
# GPT forward (glue in JAX, hot paths in Pallas)
# ----------------------------------------------------------------------------
def prepare_params(params):
    """Fuse QKV and cast matmul weights to bf16 for the Pallas path.
    Biases / LayerNorm params / embeddings stay f32; accumulation is f32."""
    prepared = {
        'tok_emb': params['tok_emb'],
        'pos_emb': params['pos_emb'],
        'lnf_w': params['lnf_w'],
        'lnf_b': params['lnf_b'],
        'head_w': params['head_w'].astype(jnp.bfloat16),
    }
    blocks = []
    for p in params['blocks']:
        blocks.append(dict(
            ln1_w=p['ln1_w'], ln1_b=p['ln1_b'],
            wqkv=jnp.concatenate([p['wq'], p['wk'], p['wv']], axis=1).astype(jnp.bfloat16),
            bqkv=jnp.concatenate([p['bq'], p['bk'], p['bv']], axis=1),
            wp=p['wp'].astype(jnp.bfloat16), bp=p['bp'],
            ln2_w=p['ln2_w'], ln2_b=p['ln2_b'],
            w1=p['w1'].astype(jnp.bfloat16), b1=p['b1'],
            w2=p['w2'].astype(jnp.bfloat16), b2=p['b2'],
        ))
    prepared['blocks'] = blocks
    return prepared


def gpt_forward(params, idx, cfg):
    b, t = idx.shape
    V, Td, C = cfg['vocab_size'], cfg['transition_dim'], cfg['n_embd']
    assert t <= cfg['block_size']

    # offset_tokens
    n_states = -(-t // Td)
    offsets = jnp.tile(jnp.arange(Td) * V, n_states)[:t]
    offset_idx = jnp.where(idx == V, V * Td, idx + offsets[None, :])

    # embeddings (gather kept in JAX glue); dropout = identity (eval)
    x = params['tok_emb'][offset_idx] + params['pos_emb'][:, :t, :]    # (b, t, C) f32

    joined = cfg['observation_dim'] + cfg['action_dim'] + 2

    x_flat = x.reshape(b * t, C)               # free reshape: batch*seq -> matmul M dim
    for blk in params['blocks']:
        x_flat = run_block(x_flat, blk, cfg['n_head'], b, t, joined)

    # pad_to_full_observation (the final LayerNorm is fused into the head kernel;
    # padded rows produce garbage logits that are sliced off below, same as ref)
    n_pad = (Td - t % Td) % Td
    x = x_flat.reshape(b, t, C)
    x_pad = jnp.concatenate([x, jnp.zeros((b, n_pad, C), x.dtype)], axis=1)
    x_pad = x_pad.reshape(-1, Td, C)           # (Bp, Td, C), free reshape (no transpose)
    logits = run_head(x_pad, params['lnf_w'], params['lnf_b'], params['head_w'])
    logits = logits.reshape(b, t + n_pad, V + 1)[:, :t]
    # TODO(synk): targets/loss/info branch (cross-entropy + nan-masked stats) not ported.
    return logits, None, None


# ----------------------------------------------------------------------------
# Pure-JAX f32 reference (mirrors PyTorch semantics) for verification
# ----------------------------------------------------------------------------
def _make_mask(t, joined_dim):
    mask = jnp.tril(jnp.ones((t, t), jnp.float32))
    cols = jnp.arange(t)
    return jnp.where(((cols % joined_dim) == (joined_dim - 1))[None, :], 0.0, mask)


def _ref_ln(x, w, b, eps=1e-5):
    mu = x.mean(-1, keepdims=True)
    var = ((x - mu) ** 2).mean(-1, keepdims=True)
    return (x - mu) / jnp.sqrt(var + eps) * w + b


def _ref_block(x, mask, p, n_head):
    B, T, C = x.shape
    D = C // n_head
    h = _ref_ln(x, p['ln1_w'], p['ln1_b'])
    q = (h @ p['wq'] + p['bq']).reshape(B, T, n_head, D).transpose(0, 2, 1, 3)
    k = (h @ p['wk'] + p['bk']).reshape(B, T, n_head, D).transpose(0, 2, 1, 3)
    v = (h @ p['wv'] + p['bv']).reshape(B, T, n_head, D).transpose(0, 2, 1, 3)
    att = (q @ jnp.swapaxes(k, -2, -1)) / math.sqrt(D)
    att = jnp.where(mask[None, None] > 0, att, -jnp.inf)
    att = jax.nn.softmax(att, axis=-1)
    y = (att @ v).transpose(0, 2, 1, 3).reshape(B, T, C)
    x = x + (y @ p['wp'] + p['bp'])
    h2 = _ref_ln(x, p['ln2_w'], p['ln2_b'])
    m = jax.nn.gelu(h2 @ p['w1'] + p['b1'], approximate=False) @ p['w2'] + p['b2']
    return x + m


def ref_forward(params, idx, cfg):
    b, t = idx.shape
    V, Td, C = cfg['vocab_size'], cfg['transition_dim'], cfg['n_embd']
    n_states = -(-t // Td)
    offsets = jnp.tile(jnp.arange(Td) * V, n_states)[:t]
    offset_idx = jnp.where(idx == V, V * Td, idx + offsets[None, :])
    x = params['tok_emb'][offset_idx] + params['pos_emb'][:, :t, :]
    mask = _make_mask(t, cfg['observation_dim'] + cfg['action_dim'] + 2)
    for p in params['blocks']:
        x = _ref_block(x, mask, p, cfg['n_head'])
    x = _ref_ln(x, params['lnf_w'], params['lnf_b'])
    n_pad = (Td - t % Td) % Td
    x_pad = jnp.concatenate([x, jnp.zeros((b, n_pad, C), x.dtype)], axis=1).reshape(-1, Td, C)
    logits = jnp.einsum('eoi,bei->beo', params['head_w'], x_pad)
    return logits.reshape(b, t + n_pad, V + 1)[:, :t]


# ----------------------------------------------------------------------------
# Deterministic parameter init (matches GPT._init_weights semantics)
# ----------------------------------------------------------------------------
def init_params(key, cfg):
    C, V, Td = cfg['n_embd'], cfg['vocab_size'], cfg['transition_dim']
    k_tok, k_head, *k_blocks = jax.random.split(key, 2 + cfg['n_layer'])
    params = {
        'tok_emb': 0.02 * jax.random.normal(k_tok, (V * Td + 1, C), jnp.float32),
        'pos_emb': jnp.zeros((1, cfg['block_size'], C), jnp.float32),
        'lnf_w': jnp.ones((1, C), jnp.float32),
        'lnf_b': jnp.zeros((1, C), jnp.float32),
    }
    blocks = []
    for l in range(cfg['n_layer']):
        ks = jax.random.split(k_blocks[l], 6)
        blocks.append(dict(
            ln1_w=jnp.ones((1, C), jnp.float32), ln1_b=jnp.zeros((1, C), jnp.float32),
            wq=0.02 * jax.random.normal(ks[0], (C, C), jnp.float32), bq=jnp.zeros((1, C), jnp.float32),
            wk=0.02 * jax.random.normal(ks[1], (C, C), jnp.float32), bk=jnp.zeros((1, C), jnp.float32),
            wv=0.02 * jax.random.normal(ks[2], (C, C), jnp.float32), bv=jnp.zeros((1, C), jnp.float32),
            wp=0.02 * jax.random.normal(ks[3], (C, C), jnp.float32), bp=jnp.zeros((1, C), jnp.float32),
            ln2_w=jnp.ones((1, C), jnp.float32), ln2_b=jnp.zeros((1, C), jnp.float32),
            w1=0.02 * jax.random.normal(ks[4], (C, 4 * C), jnp.float32), b1=jnp.zeros((1, 4 * C), jnp.float32),
            w2=0.02 * jax.random.normal(ks[5], (4 * C, C), jnp.float32), b2=jnp.zeros((1, C), jnp.float32),
        ))
    params['blocks'] = blocks
    # EinLinear head: kaiming_uniform-like bound = 1/sqrt(fan_in)
    bound = 1.0 / math.sqrt(C)
    params['head_w'] = jax.random.uniform(k_head, (Td, V + 1, C), jnp.float32, -bound, bound)
    return params


# ----------------------------------------------------------------------------
if __name__ == "__main__":
    cfg = dict(
        vocab_size=10,
        observation_dim=3,
        action_dim=1,
        transition_dim=6,          # obs + act + 2 (reward, value)
        n_embd=32,
        n_head=4,
        n_layer=2,
        block_size=24,
    )
    key = jax.random.PRNGKey(0)
    pkey, ikey = jax.random.split(key)
    params = init_params(pkey, cfg)
    pallas_params = prepare_params(params)

    b, t = 2, 11   # t not a multiple of transition_dim -> exercises padding path
    idx = jax.random.randint(ikey, (b, t), 0, cfg['vocab_size'] + 1, dtype=jnp.int32)

    logits, loss, info = gpt_forward(pallas_params, idx, cfg)
    logits = jax.block_until_ready(logits)
    assert logits.shape == (b, t, cfg['vocab_size'] + 1), logits.shape

    ref = jax.block_until_ready(ref_forward(params, idx, cfg))
    # bf16 MXU operands / approx reciprocal vs a pure-f32 reference -> allow
    # a few bf16 ulps of drift (structural bugs would be O(0.5) off).
    if not bool(jnp.allclose(logits, ref, atol=5e-2, rtol=5e-2)):
        max_err = float(jnp.max(jnp.abs(logits - ref)))
        raise AssertionError(f"Pallas output does not match JAX reference (max err {max_err:.4f})")

    print("KERNEL_OK")
</pallas_src>

<mosaic_0001>
module attributes {stable_mosaic.version = 11 : i64} {
  func.func @_block_kernel(%arg0: i32, %arg1: memref<22x32xf32, #tpu.memory_space<vmem>>, %arg2: memref<1x32xf32, #tpu.memory_space<vmem>>, %arg3: memref<1x32xf32, #tpu.memory_space<vmem>>, %arg4: memref<32x96xbf16, #tpu.memory_space<vmem>>, %arg5: memref<1x96xf32, #tpu.memory_space<vmem>>, %arg6: memref<32x32xbf16, #tpu.memory_space<vmem>>, %arg7: memref<1x32xf32, #tpu.memory_space<vmem>>, %arg8: memref<1x32xf32, #tpu.memory_space<vmem>>, %arg9: memref<1x32xf32, #tpu.memory_space<vmem>>, %arg10: memref<32x128xbf16, #tpu.memory_space<vmem>>, %arg11: memref<1x128xf32, #tpu.memory_space<vmem>>, %arg12: memref<128x32xbf16, #tpu.memory_space<vmem>>, %arg13: memref<1x32xf32, #tpu.memory_space<vmem>>, %arg14: memref<22x32xf32, #tpu.memory_space<vmem>>, %arg15: memref<22x32xf32, #tpu.memory_space<vmem>>) attributes {dimension_semantics = [#tpu.dimension_semantics<arbitrary>], iteration_bounds = array<i64: 1>, scalar_prefetch = 0 : i64, scratch_operands = 1 : i64, tpu.core_type = #tpu.core_type<tc>, window_params = [{pipeline_mode = #tpu.pipeline_mode<synchronous>, transform_indices = @transform_0, window_bounds = array<i64: 22, 32>}, {pipeline_mode = #tpu.pipeline_mode<synchronous>, transform_indices = @transform_1, window_bounds = array<i64: 1, 32>}, {pipeline_mode = #tpu.pipeline_mode<synchronous>, transform_indices = @transform_2, window_bounds = array<i64: 1, 32>}, {pipeline_mode = #tpu.pipeline_mode<synchronous>, transform_indices = @transform_3, window_bounds = array<i64: 32, 96>}, {pipeline_mode = #tpu.pipeline_mode<synchronous>, transform_indices = @transform_4, window_bounds = array<i64: 1, 96>}, {pipeline_mode = #tpu.pipeline_mode<synchronous>, transform_indices = @transform_5, window_bounds = array<i64: 32, 32>}, {pipeline_mode = #tpu.pipeline_mode<synchronous>, transform_indices = @transform_6, window_bounds = array<i64: 1, 32>}, {pipeline_mode = #tpu.pipeline_mode<synchronous>, transform_indices = @transform_7, window_bounds = array<i64: 1, 32>}, {pipeline_mode = #tpu.pipeline_mode<synchronous>, transform_indices = @transform_8, window_bounds = array<i64: 1, 32>}, {pipeline_mode = #tpu.pipeline_mode<synchronous>, transform_indices = @transform_9, window_bounds = array<i64: 32, 128>}, {pipeline_mode = #tpu.pipeline_mode<synchronous>, transform_indices = @transform_10, window_bounds = array<i64: 1, 128>}, {pipeline_mode = #tpu.pipeline_mode<synchronous>, transform_indices = @transform_11, window_bounds = array<i64: 128, 32>}, {pipeline_mode = #tpu.pipeline_mode<synchronous>, transform_indices = @transform_12, window_bounds = array<i64: 1, 32>}, {pipeline_mode = #tpu.pipeline_mode<synchronous>, transform_indices = @transform_13, window_bounds = array<i64: 22, 32>}]} {
    %c0 = arith.constant 0 : index
    %c0_0 = arith.constant 0 : index
    %0 = vector.load %arg1[%c0, %c0_0] : memref<22x32xf32, #tpu.memory_space<vmem>>, vector<22x32xf32>
    %c0_1 = arith.constant 0 : index
    %c0_2 = arith.constant 0 : index
    %1 = vector.load %arg2[%c0_1, %c0_2] : memref<1x32xf32, #tpu.memory_space<vmem>>, vector<1x32xf32>
    %c0_3 = arith.constant 0 : index
    %c0_4 = arith.constant 0 : index
    %2 = vector.load %arg3[%c0_3, %c0_4] : memref<1x32xf32, #tpu.memory_space<vmem>>, vector<1x32xf32>
    %cst = arith.constant dense<0.000000e+00> : vector<22xf32>
    %3 = vector.multi_reduction <add>, %0, %cst [1] : vector<22x32xf32> to vector<22xf32>
    %4 = vector.shape_cast %3 : vector<22xf32> to vector<22x1xf32>
    %cst_5 = arith.constant 3.200000e+01 : f32
    %5 = vector.broadcast %cst_5 : f32 to vector<22x1xf32>
    %6 = arith.divf %4, %5 : vector<22x1xf32>
    %7 = vector.broadcast %6 : vector<22x1xf32> to vector<22x32xf32>
    %8 = arith.subf %0, %7 : vector<22x32xf32>
    %9 = arith.mulf %8, %8 : vector<22x32xf32>
    %cst_6 = arith.constant dense<0.000000e+00> : vector<22xf32>
    %10 = vector.multi_reduction <add>, %9, %cst_6 [1] : vector<22x32xf32> to vector<22xf32>
    %11 = vector.shape_cast %10 : vector<22xf32> to vector<22x1xf32>
    %cst_7 = arith.constant 3.200000e+01 : f32
    %12 = vector.broadcast %cst_7 : f32 to vector<22x1xf32>
    %13 = arith.divf %11, %12 : vector<22x1xf32>
    %14 = vector.broadcast %6 : vector<22x1xf32> to vector<22x32xf32>
    %15 = arith.subf %0, %14 : vector<22x32xf32>
    %cst_8 = arith.constant 9.99999974E-6 : f32
    %16 = vector.broadcast %cst_8 : f32 to vector<22x1xf32>
    %17 = arith.addf %13, %16 : vector<22x1xf32>
    %18 = math.rsqrt %17 : vector<22x1xf32>
    %19 = vector.broadcast %18 : vector<22x1xf32> to vector<22x32xf32>
    %20 = arith.mulf %15, %19 : vector<22x32xf32>
    %21 = vector.broadcast %1 : vector<1x32xf32> to vector<22x32xf32>
    %22 = arith.mulf %20, %21 : vector<22x32xf32>
    %23 = vector.broadcast %2 : vector<1x32xf32> to vector<22x32xf32>
    %24 = arith.addf %22, %23 : vector<22x32xf32>
    %25 = arith.truncf %24 : vector<22x32xf32> to vector<22x32xbf16>
    %c0_9 = arith.constant 0 : index
    %c0_10 = arith.constant 0 : index
    %26 = vector.load %arg4[%c0_9, %c0_10] : memref<32x96xbf16, #tpu.memory_space<vmem>>, vector<32x96xbf16>
    %cst_11 = arith.constant dense<0.000000e+00> : vector<22x96xf32>
    %27 = tpu.matmul %25, %26, %cst_11 {dimension_numbers = #tpu.dot_dimension_numbers<[1], [0], [0], [1], [0, 0, 1, 1], [], []>} : vector<22x32xbf16>, vector<32x96xbf16>, vector<22x96xf32> -> vector<22x96xf32>
    %c0_12 = arith.constant 0 : index
    %c0_13 = arith.constant 0 : index
    %28 = vector.load %arg5[%c0_12, %c0_13] : memref<1x96xf32, #tpu.memory_space<vmem>>, vector<1x96xf32>
    %29 = vector.broadcast %28 : vector<1x96xf32> to vector<22x96xf32>
    %30 = arith.addf %27, %29 : vector<22x96xf32>
    %31 = vector.extract_strided_slice %30 {offsets = [0, 0], sizes = [22, 32], strides = [1, 1]} : vector<22x96xf32> to vector<22x32xf32>
    %32 = vector.extract_strided_slice %30 {offsets = [0, 32], sizes = [22, 32], strides = [1, 1]} : vector<22x96xf32> to vector<22x32xf32>
    %33 = vector.extract_strided_slice %30 {offsets = [0, 64], sizes = [22, 32], strides = [1, 1]} : vector<22x96xf32> to vector<22x32xf32>
    %34 = tpu.iota {dimensions = array<i32: 0>} : vector<11x11xi32>
    %35 = tpu.iota {dimensions = array<i32: 1>} : vector<11x11xi32>
    %36 = arith.cmpi sle, %35, %34 : vector<11x11xi32>
    %c5_i32 = arith.constant 5 : i32
    %37 = vector.broadcast %c5_i32 : i32 to vector<11x11xi32>
    %38 = arith.cmpi ne, %35, %37 : vector<11x11xi32>
    %39 = arith.andi %36, %38 : vector<11x11xi1>
    %cst_14 = arith.constant 0.000000e+00 : f32
    %cst_15 = arith.constant -1.000000e+30 : f32
    %40 = vector.broadcast %cst_14 : f32 to vector<11x11xf32>
    %41 = vector.broadcast %cst_15 : f32 to vector<11x11xf32>
    %42 = arith.select %39, %40, %41 : vector<11x11xi1>, vector<11x11xf32>
    %43 = vector.extract_strided_slice %31 {offsets = [0, 0], sizes = [11, 8], strides = [1, 1]} : vector<22x32xf32> to vector<11x8xf32>
    %44 = arith.truncf %43 : vector<11x8xf32> to vector<11x8xbf16>
    %45 = vector.extract_strided_slice %32 {offsets = [0, 0], sizes = [11, 8], strides = [1, 1]} : vector<22x32xf32> to vector<11x8xf32>
    %46 = arith.truncf %45 : vector<11x8xf32> to vector<11x8xbf16>
    %47 = vector.extract_strided_slice %33 {offsets = [0, 0], sizes = [11, 8], strides = [1, 1]} : vector<22x32xf32> to vector<11x8xf32>
    %48 = arith.truncf %47 : vector<11x8xf32> to vector<11x8xbf16>
    %cst_16 = arith.constant dense<0.000000e+00> : vector<11x11xf32>
    %49 = tpu.matmul %44, %46, %cst_16 {dimension_numbers = #tpu.dot_dimension_numbers<[1], [1], [0], [0], [0, 0, 1, 0], [], []>} : vector<11x8xbf16>, vector<11x8xbf16>, vector<11x11xf32> -> vector<11x11xf32>
    %cst_17 = arith.constant 0.353553385 : f32
    %50 = vector.broadcast %cst_17 : f32 to vector<11x11xf32>
    %51 = arith.mulf %49, %50 : vector<11x11xf32>
    %52 = arith.addf %51, %42 : vector<11x11xf32>
    %cst_18 = arith.constant dense<0xFF800000> : vector<11xf32>
    %53 = vector.multi_reduction <maximumf>, %52, %cst_18 [1] : vector<11x11xf32> to vector<11xf32>
    %54 = vector.shape_cast %53 : vector<11xf32> to vector<11x1xf32>
    %55 = vector.broadcast %54 : vector<11x1xf32> to vector<11x11xf32>
    %56 = arith.subf %52, %55 : vector<11x11xf32>
    %57 = math.exp %56 : vector<11x11xf32>
    %cst_19 = arith.constant dense<0.000000e+00> : vector<11xf32>
    %58 = vector.multi_reduction <add>, %57, %cst_19 [1] : vector<11x11xf32> to vector<11xf32>
    %59 = vector.shape_cast %58 : vector<11xf32> to vector<11x1xf32>
    %60 = tpu.reciprocal %59 {approx = true} : vector<11x1xf32> -> vector<11x1xf32>
    %61 = vector.broadcast %60 : vector<11x1xf32> to vector<11x11xf32>
    %62 = arith.mulf %57, %61 : vector<11x11xf32>
    %63 = arith.truncf %62 : vector<11x11xf32> to vector<11x11xbf16>
    %cst_20 = arith.constant dense<0.000000e+00> : vector<11x8xf32>
    %64 = tpu.matmul %63, %48, %cst_20 {dimension_numbers = #tpu.dot_dimension_numbers<[1], [0], [0], [1], [0, 0, 1, 1], [], []>} : vector<11x11xbf16>, vector<11x8xbf16>, vector<11x8xf32> -> vector<11x8xf32>
    %c0_21 = arith.constant 0 : index
    %c0_22 = arith.constant 0 : index
    %65 = vector.load %arg15[%c0_21, %c0_22] : memref<22x32xf32, #tpu.memory_space<vmem>>, vector<11x8xf32>
    tpu.vector_store %arg15[%c0_21, %c0_22], %64 {strides = array<i32>} : memref<22x32xf32, #tpu.memory_space<vmem>>, vector<11x8xf32>,
    %66 = vector.extract_strided_slice %31 {offsets = [0, 8], sizes = [11, 8], strides = [1, 1]} : vector<22x32xf32> to vector<11x8xf32>
    %67 = arith.truncf %66 : vector<11x8xf32> to vector<11x8xbf16>
    %68 = vector.extract_strided_slice %32 {offsets = [0, 8], sizes = [11, 8], strides = [1, 1]} : vector<22x32xf32> to vector<11x8xf32>
    %69 = arith.truncf %68 : vector<11x8xf32> to vector<11x8xbf16>
    %70 = vector.extract_strided_slice %33 {offsets = [0, 8], sizes = [11, 8], strides = [1, 1]} : vector<22x32xf32> to vector<11x8xf32>
    %71 = arith.truncf %70 : vector<11x8xf32> to vector<11x8xbf16>
    %cst_23 = arith.constant dense<0.000000e+00> : vector<11x11xf32>
    %72 = tpu.matmul %67, %69, %cst_23 {dimension_numbers = #tpu.dot_dimension_numbers<[1], [1], [0], [0], [0, 0, 1, 0], [], []>} : vector<11x8xbf16>, vector<11x8xbf16>, vector<11x11xf32> -> vector<11x11xf32>
    %cst_24 = arith.constant 0.353553385 : f32
    %73 = vector.broadcast %cst_24 : f32 to vector<11x11xf32>
    %74 = arith.mulf %72, %73 : vector<11x11xf32>
    %75 = arith.addf %74, %42 : vector<11x11xf32>
    %cst_25 = arith.constant dense<0xFF800000> : vector<11xf32>
    %76 = vector.multi_reduction <maximumf>, %75, %cst_25 [1] : vector<11x11xf32> to vector<11xf32>
    %77 = vector.shape_cast %76 : vector<11xf32> to vector<11x1xf32>
    %78 = vector.broadcast %77 : vector<11x1xf32> to vector<11x11xf32>
    %79 = arith.subf %75, %78 : vector<11x11xf32>
    %80 = math.exp %79 : vector<11x11xf32>
    %cst_26 = arith.constant dense<0.000000e+00> : vector<11xf32>
    %81 = vector.multi_reduction <add>, %80, %cst_26 [1] : vector<11x11xf32> to vector<11xf32>
    %82 = vector.shape_cast %81 : vector<11xf32> to vector<11x1xf32>
    %83 = tpu.reciprocal %82 {approx = true} : vector<11x1xf32> -> vector<11x1xf32>
    %84 = vector.broadcast %83 : vector<11x1xf32> to vector<11x11xf32>
    %85 = arith.mulf %80, %84 : vector<11x11xf32>
    %86 = arith.truncf %85 : vector<11x11xf32> to vector<11x11xbf16>
    %cst_27 = arith.constant dense<0.000000e+00> : vector<11x8xf32>
    %87 = tpu.matmul %86, %71, %cst_27 {dimension_numbers = #tpu.dot_dimension_numbers<[1], [0], [0], [1], [0, 0, 1, 1], [], []>} : vector<11x11xbf16>, vector<11x8xbf16>, vector<11x8xf32> -> vector<11x8xf32>
    %c0_28 = arith.constant 0 : index
    %c8 = arith.constant 8 : index
    %88 = vector.load %arg15[%c0_28, %c8] : memref<22x32xf32, #tpu.memory_space<vmem>>, vector<11x8xf32>
    tpu.vector_store %arg15[%c0_28, %c8], %87 {strides = array<i32>} : memref<22x32xf32, #tpu.memory_space<vmem>>, vector<11x8xf32>,
    %89 = vector.extract_strided_slice %31 {offsets = [0, 16], sizes = [11, 8], strides = [1, 1]} : vector<22x32xf32> to vector<11x8xf32>
    %90 = arith.truncf %89 : vector<11x8xf32> to vector<11x8xbf16>
    %91 = vector.extract_strided_slice %32 {offsets = [0, 16], sizes = [11, 8], strides = [1, 1]} : vector<22x32xf32> to vector<11x8xf32>
    %92 = arith.truncf %91 : vector<11x8xf32> to vector<11x8xbf16>
    %93 = vector.extract_strided_slice %33 {offsets = [0, 16], sizes = [11, 8], strides = [1, 1]} : vector<22x32xf32> to vector<11x8xf32>
    %94 = arith.truncf %93 : vector<11x8xf32> to vector<11x8xbf16>
    %cst_29 = arith.constant dense<0.000000e+00> : vector<11x11xf32>
    %95 = tpu.matmul %90, %92, %cst_29 {dimension_numbers = #tpu.dot_dimension_numbers<[1], [1], [0], [0], [0, 0, 1, 0], [], []>} : vector<11x8xbf16>, vector<11x8xbf16>, vector<11x11xf32> -> vector<11x11xf32>
    %cst_30 = arith.constant 0.353553385 : f32
    %96 = vector.broadcast %cst_30 : f32 to vector<11x11xf32>
    %97 = arith.mulf %95, %96 : vector<11x11xf32>
    %98 = arith.addf %97, %42 : vector<11x11xf32>
    %cst_31 = arith.constant dense<0xFF800000> : vector<11xf32>
    %99 = vector.multi_reduction <maximumf>, %98, %cst_31 [1] : vector<11x11xf32> to vector<11xf32>
    %100 = vector.shape_cast %99 : vector<11xf32> to vector<11x1xf32>
    %101 = vector.broadcast %100 : vector<11x1xf32> to vector<11x11xf32>
    %102 = arith.subf %98, %101 : vector<11x11xf32>
    %103 = math.exp %102 : vector<11x11xf32>
    %cst_32 = arith.constant dense<0.000000e+00> : vector<11xf32>
    %104 = vector.multi_reduction <add>, %103, %cst_32 [1] : vector<11x11xf32> to vector<11xf32>
    %105 = vector.shape_cast %104 : vector<11xf32> to vector<11x1xf32>
    %106 = tpu.reciprocal %105 {approx = true} : vector<11x1xf32> -> vector<11x1xf32>
    %107 = vector.broadcast %106 : vector<11x1xf32> to vector<11x11xf32>
    %108 = arith.mulf %103, %107 : vector<11x11xf32>
    %109 = arith.truncf %108 : vector<11x11xf32> to vector<11x11xbf16>
    %cst_33 = arith.constant dense<0.000000e+00> : vector<11x8xf32>
    %110 = tpu.matmul %109, %94, %cst_33 {dimension_numbers = #tpu.dot_dimension_numbers<[1], [0], [0], [1], [0, 0, 1, 1], [], []>} : vector<11x11xbf16>, vector<11x8xbf16>, vector<11x8xf32> -> vector<11x8xf32>
    %c0_34 = arith.constant 0 : index
    %c16 = arith.constant 16 : index
    %111 = vector.load %arg15[%c0_34, %c16] : memref<22x32xf32, #tpu.memory_space<vmem>>, vector<11x8xf32>
    tpu.vector_store %arg15[%c0_34, %c16], %110 {strides = array<i32>} : memref<22x32xf32, #tpu.memory_space<vmem>>, vector<11x8xf32>,
    %112 = vector.extract_strided_slice %31 {offsets = [0, 24], sizes = [11, 8], strides = [1, 1]} : vector<22x32xf32> to vector<11x8xf32>
    %113 = arith.truncf %112 : vector<11x8xf32> to vector<11x8xbf16>
    %114 = vector.extract_strided_slice %32 {offsets = [0, 24], sizes = [11, 8], strides = [1, 1]} : vector<22x32xf32> to vector<11x8xf32>
    %115 = arith.truncf %114 : vector<11x8xf32> to vector<11x8xbf16>
    %116 = vector.extract_strided_slice %33 {offsets = [0, 24], sizes = [11, 8], strides = [1, 1]} : vector<22x32xf32> to vector<11x8xf32>
    %117 = arith.truncf %116 : vector<11x8xf32> to vector<11x8xbf16>
    %cst_35 = arith.constant dense<0.000000e+00> : vector<11x11xf32>
    %118 = tpu.matmul %113, %115, %cst_35 {dimension_numbers = #tpu.dot_dimension_numbers<[1], [1], [0], [0], [0, 0, 1, 0], [], []>} : vector<11x8xbf16>, vector<11x8xbf16>, vector<11x11xf32> -> vector<11x11xf32>
    %cst_36 = arith.constant 0.353553385 : f32
    %119 = vector.broadcast %cst_36 : f32 to vector<11x11xf32>
    %120 = arith.mulf %118, %119 : vector<11x11xf32>
    %121 = arith.addf %120, %42 : vector<11x11xf32>
    %cst_37 = arith.constant dense<0xFF800000> : vector<11xf32>
    %122 = vector.multi_reduction <maximumf>, %121, %cst_37 [1] : vector<11x11xf32> to vector<11xf32>
    %123 = vector.shape_cast %122 : vector<11xf32> to vector<11x1xf32>
    %124 = vector.broadcast %123 : vector<11x1xf32> to vector<11x11xf32>
    %125 = arith.subf %121, %124 : vector<11x11xf32>
    %126 = math.exp %125 : vector<11x11xf32>
    %cst_38 = arith.constant dense<0.000000e+00> : vector<11xf32>
    %127 = vector.multi_reduction <add>, %126, %cst_38 [1] : vector<11x11xf32> to vector<11xf32>
    %128 = vector.shape_cast %127 : vector<11xf32> to vector<11x1xf32>
    %129 = tpu.reciprocal %128 {approx = true} : vector<11x1xf32> -> vector<11x1xf32>
    %130 = vector.broadcast %129 : vector<11x1xf32> to vector<11x11xf32>
    %131 = arith.mulf %126, %130 : vector<11x11xf32>
    %132 = arith.truncf %131 : vector<11x11xf32> to vector<11x11xbf16>
    %cst_39 = arith.constant dense<0.000000e+00> : vector<11x8xf32>
    %133 = tpu.matmul %132, %117, %cst_39 {dimension_numbers = #tpu.dot_dimension_numbers<[1], [0], [0], [1], [0, 0, 1, 1], [], []>} : vector<11x11xbf16>, vector<11x8xbf16>, vector<11x8xf32> -> vector<11x8xf32>
    %c0_40 = arith.constant 0 : index
    %c24 = arith.constant 24 : index
    %134 = vector.load %arg15[%c0_40, %c24] : memref<22x32xf32, #tpu.memory_space<vmem>>, vector<11x8xf32>
    tpu.vector_store %arg15[%c0_40, %c24], %133 {strides = array<i32>} : memref<22x32xf32, #tpu.memory_space<vmem>>, vector<11x8xf32>,
    %135 = vector.extract_strided_slice %31 {offsets = [11, 0], sizes = [11, 8], strides = [1, 1]} : vector<22x32xf32> to vector<11x8xf32>
    %136 = arith.truncf %135 : vector<11x8xf32> to vector<11x8xbf16>
    %137 = vector.extract_strided_slice %32 {offsets = [11, 0], sizes = [11, 8], strides = [1, 1]} : vector<22x32xf32> to vector<11x8xf32>
    %138 = arith.truncf %137 : vector<11x8xf32> to vector<11x8xbf16>
    %139 = vector.extract_strided_slice %33 {offsets = [11, 0], sizes = [11, 8], strides = [1, 1]} : vector<22x32xf32> to vector<11x8xf32>
    %140 = arith.truncf %139 : vector<11x8xf32> to vector<11x8xbf16>
    %cst_41 = arith.constant dense<0.000000e+00> : vector<11x11xf32>
    %141 = tpu.matmul %136, %138, %cst_41 {dimension_numbers = #tpu.dot_dimension_numbers<[1], [1], [0], [0], [0, 0, 1, 0], [], []>} : vector<11x8xbf16>, vector<11x8xbf16>, vector<11x11xf32> -> vector<11x11xf32>
    %cst_42 = arith.constant 0.353553385 : f32
    %142 = vector.broadcast %cst_42 : f32 to vector<11x11xf32>
    %143 = arith.mulf %141, %142 : vector<11x11xf32>
    %144 = arith.addf %143, %42 : vector<11x11xf32>
    %cst_43 = arith.constant dense<0xFF800000> : vector<11xf32>
    %145 = vector.multi_reduction <maximumf>, %144, %cst_43 [1] : vector<11x11xf32> to vector<11xf32>
    %146 = vector.shape_cast %145 : vector<11xf32> to vector<11x1xf32>
    %147 = vector.broadcast %146 : vector<11x1xf32> to vector<11x11xf32>
    %148 = arith.subf %144, %147 : vector<11x11xf32>
    %149 = math.exp %148 : vector<11x11xf32>
    %cst_44 = arith.constant dense<0.000000e+00> : vector<11xf32>
    %150 = vector.multi_reduction <add>, %149, %cst_44 [1] : vector<11x11xf32> to vector<11xf32>
    %151 = vector.shape_cast %150 : vector<11xf32> to vector<11x1xf32>
    %152 = tpu.reciprocal %151 {approx = true} : vector<11x1xf32> -> vector<11x1xf32>
    %153 = vector.broadcast %152 : vector<11x1xf32> to vector<11x11xf32>
    %154 = arith.mulf %149, %153 : vector<11x11xf32>
    %155 = arith.truncf %154 : vector<11x11xf32> to vector<11x11xbf16>
    %cst_45 = arith.constant dense<0.000000e+00> : vector<11x8xf32>
    %156 = tpu.matmul %155, %140, %cst_45 {dimension_numbers = #tpu.dot_dimension_numbers<[1], [0], [0], [1], [0, 0, 1, 1], [], []>} : vector<11x11xbf16>, vector<11x8xbf16>, vector<11x8xf32> -> vector<11x8xf32>
    %c11 = arith.constant 11 : index
    %c0_46 = arith.constant 0 : index
    %157 = vector.load %arg15[%c11, %c0_46] : memref<22x32xf32, #tpu.memory_space<vmem>>, vector<11x8xf32>
    tpu.vector_store %arg15[%c11, %c0_46], %156 {strides = array<i32>} : memref<22x32xf32, #tpu.memory_space<vmem>>, vector<11x8xf32>,
    %158 = vector.extract_strided_slice %31 {offsets = [11, 8], sizes = [11, 8], strides = [1, 1]} : vector<22x32xf32> to vector<11x8xf32>
    %159 = arith.truncf %158 : vector<11x8xf32> to vector<11x8xbf16>
    %160 = vector.extract_strided_slice %32 {offsets = [11, 8], sizes = [11, 8], strides = [1, 1]} : vector<22x32xf32> to vector<11x8xf32>
    %161 = arith.truncf %160 : vector<11x8xf32> to vector<11x8xbf16>
    %162 = vector.extract_strided_slice %33 {offsets = [11, 8], sizes = [11, 8], strides = [1, 1]} : vector<22x32xf32> to vector<11x8xf32>
    %163 = arith.truncf %162 : vector<11x8xf32> to vector<11x8xbf16>
    %cst_47 = arith.constant dense<0.000000e+00> : vector<11x11xf32>
    %164 = tpu.matmul %159, %161, %cst_47 {dimension_numbers = #tpu.dot_dimension_numbers<[1], [1], [0], [0], [0, 0, 1, 0], [], []>} : vector<11x8xbf16>, vector<11x8xbf16>, vector<11x11xf32> -> vector<11x11xf32>
    %cst_48 = arith.constant 0.353553385 : f32
    %165 = vector.broadcast %cst_48 : f32 to vector<11x11xf32>
    %166 = arith.mulf %164, %165 : vector<11x11xf32>
    %167 = arith.addf %166, %42 : vector<11x11xf32>
    %cst_49 = arith.constant dense<0xFF800000> : vector<11xf32>
    %168 = vector.multi_reduction <maximumf>, %167, %cst_49 [1] : vector<11x11xf32> to vector<11xf32>
    %169 = vector.shape_cast %168 : vector<11xf32> to vector<11x1xf32>
    %170 = vector.broadcast %169 : vector<11x1xf32> to vector<11x11xf32>
    %171 = arith.subf %167, %170 : vector<11x11xf32>
    %172 = math.exp %171 : vector<11x11xf32>
    %cst_50 = arith.constant dense<0.000000e+00> : vector<11xf32>
    %173 = vector.multi_reduction <add>, %172, %cst_50 [1] : vector<11x11xf32> to vector<11xf32>
    %174 = vector.shape_cast %173 : vector<11xf32> to vector<11x1xf32>
    %175 = tpu.reciprocal %174 {approx = true} : vector<11x1xf32> -> vector<11x1xf32>
    %176 = vector.broadcast %175 : vector<11x1xf32> to vector<11x11xf32>
    %177 = arith.mulf %172, %176 : vector<11x11xf32>
    %178 = arith.truncf %177 : vector<11x11xf32> to vector<11x11xbf16>
    %cst_51 = arith.constant dense<0.000000e+00> : vector<11x8xf32>
    %179 = tpu.matmul %178, %163, %cst_51 {dimension_numbers = #tpu.dot_dimension_numbers<[1], [0], [0], [1], [0, 0, 1, 1], [], []>} : vector<11x11xbf16>, vector<11x8xbf16>, vector<11x8xf32> -> vector<11x8xf32>
    %c11_52 = arith.constant 11 : index
    %c8_53 = arith.constant 8 : index
    %180 = vector.load %arg15[%c11_52, %c8_53] : memref<22x32xf32, #tpu.memory_space<vmem>>, vector<11x8xf32>
    tpu.vector_store %arg15[%c11_52, %c8_53], %179 {strides = array<i32>} : memref<22x32xf32, #tpu.memory_space<vmem>>, vector<11x8xf32>,
    %181 = vector.extract_strided_slice %31 {offsets = [11, 16], sizes = [11, 8], strides = [1, 1]} : vector<22x32xf32> to vector<11x8xf32>
    %182 = arith.truncf %181 : vector<11x8xf32> to vector<11x8xbf16>
    %183 = vector.extract_strided_slice %32 {offsets = [11, 16], sizes = [11, 8], strides = [1, 1]} : vector<22x32xf32> to vector<11x8xf32>
    %184 = arith.truncf %183 : vector<11x8xf32> to vector<11x8xbf16>
    %185 = vector.extract_strided_slice %33 {offsets = [11, 16], sizes = [11, 8], strides = [1, 1]} : vector<22x32xf32> to vector<11x8xf32>
    %186 = arith.truncf %185 : vector<11x8xf32> to vector<11x8xbf16>
    %cst_54 = arith.constant dense<0.000000e+00> : vector<11x11xf32>
    %187 = tpu.matmul %182, %184, %cst_54 {dimension_numbers = #tpu.dot_dimension_numbers<[1], [1], [0], [0], [0, 0, 1, 0], [], []>} : vector<11x8xbf16>, vector<11x8xbf16>, vector<11x11xf32> -> vector<11x11xf32>
    %cst_55 = arith.constant 0.353553385 : f32
    %188 = vector.broadcast %cst_55 : f32 to vector<11x11xf32>
    %189 = arith.mulf %187, %188 : vector<11x11xf32>
    %190 = arith.addf %189, %42 : vector<11x11xf32>
    %cst_56 = arith.constant dense<0xFF800000> : vector<11xf32>
    %191 = vector.multi_reduction <maximumf>, %190, %cst_56 [1] : vector<11x11xf32> to vector<11xf32>
    %192 = vector.shape_cast %191 : vector<11xf32> to vector<11x1xf32>
    %193 = vector.broadcast %192 : vector<11x1xf32> to vector<11x11xf32>
    %194 = arith.subf %190, %193 : vector<11x11xf32>
    %195 = math.exp %194 : vector<11x11xf32>
    %cst_57 = arith.constant dense<0.000000e+00> : vector<11xf32>
    %196 = vector.multi_reduction <add>, %195, %cst_57 [1] : vector<11x11xf32> to vector<11xf32>
    %197 = vector.shape_cast %196 : vector<11xf32> to vector<11x1xf32>
    %198 = tpu.reciprocal %197 {approx = true} : vector<11x1xf32> -> vector<11x1xf32>
    %199 = vector.broadcast %198 : vector<11x1xf32> to vector<11x11xf32>
    %200 = arith.mulf %195, %199 : vector<11x11xf32>
    %201 = arith.truncf %200 : vector<11x11xf32> to vector<11x11xbf16>
    %cst_58 = arith.constant dense<0.000000e+00> : vector<11x8xf32>
    %202 = tpu.matmul %201, %186, %cst_58 {dimension_numbers = #tpu.dot_dimension_numbers<[1], [0], [0], [1], [0, 0, 1, 1], [], []>} : vector<11x11xbf16>, vector<11x8xbf16>, vector<11x8xf32> -> vector<11x8xf32>
    %c11_59 = arith.constant 11 : index
    %c16_60 = arith.constant 16 : index
    %203 = vector.load %arg15[%c11_59, %c16_60] : memref<22x32xf32, #tpu.memory_space<vmem>>, vector<11x8xf32>
    tpu.vector_store %arg15[%c11_59, %c16_60], %202 {strides = array<i32>} : memref<22x32xf32, #tpu.memory_space<vmem>>, vector<11x8xf32>,
    %204 = vector.extract_strided_slice %31 {offsets = [11, 24], sizes = [11, 8], strides = [1, 1]} : vector<22x32xf32> to vector<11x8xf32>
    %205 = arith.truncf %204 : vector<11x8xf32> to vector<11x8xbf16>
    %206 = vector.extract_strided_slice %32 {offsets = [11, 24], sizes = [11, 8], strides = [1, 1]} : vector<22x32xf32> to vector<11x8xf32>
    %207 = arith.truncf %206 : vector<11x8xf32> to vector<11x8xbf16>
    %208 = vector.extract_strided_slice %33 {offsets = [11, 24], sizes = [11, 8], strides = [1, 1]} : vector<22x32xf32> to vector<11x8xf32>
    %209 = arith.truncf %208 : vector<11x8xf32> to vector<11x8xbf16>
    %cst_61 = arith.constant dense<0.000000e+00> : vector<11x11xf32>
    %210 = tpu.matmul %205, %207, %cst_61 {dimension_numbers = #tpu.dot_dimension_numbers<[1], [1], [0], [0], [0, 0, 1, 0], [], []>} : vector<11x8xbf16>, vector<11x8xbf16>, vector<11x11xf32> -> vector<11x11xf32>
    %cst_62 = arith.constant 0.353553385 : f32
    %211 = vector.broadcast %cst_62 : f32 to vector<11x11xf32>
    %212 = arith.mulf %210, %211 : vector<11x11xf32>
    %213 = arith.addf %212, %42 : vector<11x11xf32>
    %cst_63 = arith.constant dense<0xFF800000> : vector<11xf32>
    %214 = vector.multi_reduction <maximumf>, %213, %cst_63 [1] : vector<11x11xf32> to vector<11xf32>
    %215 = vector.shape_cast %214 : vector<11xf32> to vector<11x1xf32>
    %216 = vector.broadcast %215 : vector<11x1xf32> to vector<11x11xf32>
    %217 = arith.subf %213, %216 : vector<11x11xf32>
    %218 = math.exp %217 : vector<11x11xf32>
    %cst_64 = arith.constant dense<0.000000e+00> : vector<11xf32>
    %219 = vector.multi_reduction <add>, %218, %cst_64 [1] : vector<11x11xf32> to vector<11xf32>
    %220 = vector.shape_cast %219 : vector<11xf32> to vector<11x1xf32>
    %221 = tpu.reciprocal %220 {approx = true} : vector<11x1xf32> -> vector<11x1xf32>
    %222 = vector.broadcast %221 : vector<11x1xf32> to vector<11x11xf32>
    %223 = arith.mulf %218, %222 : vector<11x11xf32>
    %224 = arith.truncf %223 : vector<11x11xf32> to vector<11x11xbf16>
    %cst_65 = arith.constant dense<0.000000e+00> : vector<11x8xf32>
    %225 = tpu.matmul %224, %209, %cst_65 {dimension_numbers = #tpu.dot_dimension_numbers<[1], [0], [0], [1], [0, 0, 1, 1], [], []>} : vector<11x11xbf16>, vector<11x8xbf16>, vector<11x8xf32> -> vector<11x8xf32>
    %c11_66 = arith.constant 11 : index
    %c24_67 = arith.constant 24 : index
    %226 = vector.load %arg15[%c11_66, %c24_67] : memref<22x32xf32, #tpu.memory_space<vmem>>, vector<11x8xf32>
    tpu.vector_store %arg15[%c11_66, %c24_67], %225 {strides = array<i32>} : memref<22x32xf32, #tpu.memory_space<vmem>>, vector<11x8xf32>,
    %c0_68 = arith.constant 0 : index
    %c0_69 = arith.constant 0 : index
    %227 = vector.load %arg15[%c0_68, %c0_69] : memref<22x32xf32, #tpu.memory_space<vmem>>, vector<22x32xf32>
    %228 = arith.truncf %227 : vector<22x32xf32> to vector<22x32xbf16>
    %c0_70 = arith.constant 0 : index
    %c0_71 = arith.constant 0 : index
    %229 = vector.load %arg6[%c0_70, %c0_71] : memref<32x32xbf16, #tpu.memory_space<vmem>>, vector<32x32xbf16>
    %cst_72 = arith.constant dense<0.000000e+00> : vector<22x32xf32>
    %230 = tpu.matmul %228, %229, %cst_72 {dimension_numbers = #tpu.dot_dimension_numbers<[1], [0], [0], [1], [0, 0, 1, 1], [], []>} : vector<22x32xbf16>, vector<32x32xbf16>, vector<22x32xf32> -> vector<22x32xf32>
    %c0_73 = arith.constant 0 : index
    %c0_74 = arith.constant 0 : index
    %231 = vector.load %arg7[%c0_73, %c0_74] : memref<1x32xf32, #tpu.memory_space<vmem>>, vector<1x32xf32>
    %232 = vector.broadcast %231 : vector<1x32xf32> to vector<22x32xf32>
    %233 = arith.addf %230, %232 : vector<22x32xf32>
    %234 = arith.addf %0, %233 : vector<22x32xf32>
    %c0_75 = arith.constant 0 : index
    %c0_76 = arith.constant 0 : index
    %235 = vector.load %arg8[%c0_75, %c0_76] : memref<1x32xf32, #tpu.memory_space<vmem>>, vector<1x32xf32>
    %c0_77 = arith.constant 0 : index
    %c0_78 = arith.constant 0 : index
    %236 = vector.load %arg9[%c0_77, %c0_78] : memref<1x32xf32, #tpu.memory_space<vmem>>, vector<1x32xf32>
    %cst_79 = arith.constant dense<0.000000e+00> : vector<22xf32>
    %237 = vector.multi_reduction <add>, %234, %cst_79 [1] : vector<22x32xf32> to vector<22xf32>
    %238 = vector.shape_cast %237 : vector<22xf32> to vector<22x1xf32>
    %cst_80 = arith.constant 3.200000e+01 : f32
    %239 = vector.broadcast %cst_80 : f32 to vector<22x1xf32>
    %240 = arith.divf %238, %239 : vector<22x1xf32>
    %241 = vector.broadcast %240 : vector<22x1xf32> to vector<22x32xf32>
    %242 = arith.subf %234, %241 : vector<22x32xf32>
    %243 = arith.mulf %242, %242 : vector<22x32xf32>
    %cst_81 = arith.constant dense<0.000000e+00> : vector<22xf32>
    %244 = vector.multi_reduction <add>, %243, %cst_81 [1] : vector<22x32xf32> to vector<22xf32>
    %245 = vector.shape_cast %244 : vector<22xf32> to vector<22x1xf32>
    %cst_82 = arith.constant 3.200000e+01 : f32
    %246 = vector.broadcast %cst_82 : f32 to vector<22x1xf32>
    %247 = arith.divf %245, %246 : vector<22x1xf32>
    %248 = vector.broadcast %240 : vector<22x1xf32> to vector<22x32xf32>
    %249 = arith.subf %234, %248 : vector<22x32xf32>
    %cst_83 = arith.constant 9.99999974E-6 : f32
    %250 = vector.broadcast %cst_83 : f32 to vector<22x1xf32>
    %251 = arith.addf %247, %250 : vector<22x1xf32>
    %252 = math.rsqrt %251 : vector<22x1xf32>
    %253 = vector.broadcast %252 : vector<22x1xf32> to vector<22x32xf32>
    %254 = arith.mulf %249, %253 : vector<22x32xf32>
    %255 = vector.broadcast %235 : vector<1x32xf32> to vector<22x32xf32>
    %256 = arith.mulf %254, %255 : vector<22x32xf32>
    %257 = vector.broadcast %236 : vector<1x32xf32> to vector<22x32xf32>
    %258 = arith.addf %256, %257 : vector<22x32xf32>
    %259 = arith.truncf %258 : vector<22x32xf32> to vector<22x32xbf16>
    %c0_84 = arith.constant 0 : index
    %c0_85 = arith.constant 0 : index
    %260 = vector.load %arg10[%c0_84, %c0_85] : memref<32x128xbf16, #tpu.memory_space<vmem>>, vector<32x128xbf16>
    %cst_86 = arith.constant dense<0.000000e+00> : vector<22x128xf32>
    %261 = tpu.matmul %259, %260, %cst_86 {dimension_numbers = #tpu.dot_dimension_numbers<[1], [0], [0], [1], [0, 0, 1, 1], [], []>} : vector<22x32xbf16>, vector<32x128xbf16>, vector<22x128xf32> -> vector<22x128xf32>
    %c0_87 = arith.constant 0 : index
    %c0_88 = arith.constant 0 : index
    %262 = vector.load %arg11[%c0_87, %c0_88] : memref<1x128xf32, #tpu.memory_space<vmem>>, vector<1x128xf32>
    %263 = vector.broadcast %262 : vector<1x128xf32> to vector<22x128xf32>
    %264 = arith.addf %261, %263 : vector<22x128xf32>
    %cst_89 = arith.constant 5.000000e-01 : f32
    %265 = vector.broadcast %cst_89 : f32 to vector<22x128xf32>
    %266 = arith.mulf %265, %264 : vector<22x128xf32>
    %cst_90 = arith.constant 0.707106769 : f32
    %267 = vector.broadcast %cst_90 : f32 to vector<22x128xf32>
    %268 = arith.mulf %264, %267 : vector<22x128xf32>
    %cst_91 = arith.constant 0.000000e+00 : f32
    %269 = vector.broadcast %cst_91 : f32 to vector<22x128xf32>
    %270 = arith.cmpf oge, %268, %269 : vector<22x128xf32>
    %cst_92 = arith.constant 1.000000e+00 : f32
    %cst_93 = arith.constant -1.000000e+00 : f32
    %271 = vector.broadcast %cst_92 : f32 to vector<22x128xf32>
    %272 = vector.broadcast %cst_93 : f32 to vector<22x128xf32>
    %273 = arith.select %270, %271, %272 : vector<22x128xi1>, vector<22x128xf32>
    %274 = math.absf %268 : vector<22x128xf32>
    %cst_94 = arith.constant 0.327591091 : f32
    %275 = vector.broadcast %cst_94 : f32 to vector<22x128xf32>
    %276 = arith.mulf %275, %274 : vector<22x128xf32>
    %cst_95 = arith.constant 1.000000e+00 : f32
    %277 = vector.broadcast %cst_95 : f32 to vector<22x128xf32>
    %278 = arith.addf %277, %276 : vector<22x128xf32>
    %279 = tpu.reciprocal %278 {approx = true} : vector<22x128xf32> -> vector<22x128xf32>
    %cst_96 = arith.constant 1.06140542 : f32
    %280 = vector.broadcast %cst_96 : f32 to vector<22x128xf32>
    %281 = arith.mulf %280, %279 : vector<22x128xf32>
    %cst_97 = arith.constant -1.45315206 : f32
    %282 = vector.broadcast %cst_97 : f32 to vector<22x128xf32>
    %283 = arith.addf %281, %282 : vector<22x128xf32>
    %284 = arith.mulf %283, %279 : vector<22x128xf32>
    %cst_98 = arith.constant 1.42141378 : f32
    %285 = vector.broadcast %cst_98 : f32 to vector<22x128xf32>
    %286 = arith.addf %284, %285 : vector<22x128xf32>
    %287 = arith.mulf %286, %279 : vector<22x128xf32>
    %cst_99 = arith.constant -0.284496725 : f32
    %288 = vector.broadcast %cst_99 : f32 to vector<22x128xf32>
    %289 = arith.addf %287, %288 : vector<22x128xf32>
    %290 = arith.mulf %289, %279 : vector<22x128xf32>
    %cst_100 = arith.constant 0.254829586 : f32
    %291 = vector.broadcast %cst_100 : f32 to vector<22x128xf32>
    %292 = arith.addf %290, %291 : vector<22x128xf32>
    %293 = arith.mulf %292, %279 : vector<22x128xf32>
    %cst_101 = arith.constant 0.000000e+00 : f32
    %294 = vector.broadcast %cst_101 : f32 to vector<22x128xf32>
    %295 = arith.subf %294, %274 : vector<22x128xf32>
    %296 = arith.mulf %295, %274 : vector<22x128xf32>
    %297 = math.exp %296 : vector<22x128xf32>
    %298 = arith.mulf %293, %297 : vector<22x128xf32>
    %cst_102 = arith.constant 1.000000e+00 : f32
    %299 = vector.broadcast %cst_102 : f32 to vector<22x128xf32>
    %300 = arith.subf %299, %298 : vector<22x128xf32>
    %301 = arith.mulf %273, %300 : vector<22x128xf32>
    %cst_103 = arith.constant 1.000000e+00 : f32
    %302 = vector.broadcast %cst_103 : f32 to vector<22x128xf32>
    %303 = arith.addf %302, %301 : vector<22x128xf32>
    %304 = arith.mulf %266, %303 : vector<22x128xf32>
    %305 = arith.truncf %304 : vector<22x128xf32> to vector<22x128xbf16>
    %c0_104 = arith.constant 0 : index
    %c0_105 = arith.constant 0 : index
    %306 = vector.load %arg12[%c0_104, %c0_105] : memref<128x32xbf16, #tpu.memory_space<vmem>>, vector<128x32xbf16>
    %cst_106 = arith.constant dense<0.000000e+00> : vector<22x32xf32>
    %307 = tpu.matmul %305, %306, %cst_106 {dimension_numbers = #tpu.dot_dimension_numbers<[1], [0], [0], [1], [0, 0, 1, 1], [], []>} : vector<22x128xbf16>, vector<128x32xbf16>, vector<22x32xf32> -> vector<22x32xf32>
    %c0_107 = arith.constant 0 : index
    %c0_108 = arith.constant 0 : index
    %308 = vector.load %arg13[%c0_107, %c0_108] : memref<1x32xf32, #tpu.memory_space<vmem>>, vector<1x32xf32>
    %309 = vector.broadcast %308 : vector<1x32xf32> to vector<22x32xf32>
    %310 = arith.addf %307, %309 : vector<22x32xf32>
    %311 = arith.addf %234, %310 : vector<22x32xf32>
    %c0_109 = arith.constant 0 : index
    %c0_110 = arith.constant 0 : index
    %312 = vector.load %arg14[%c0_109, %c0_110] : memref<22x32xf32, #tpu.memory_space<vmem>>, vector<22x32xf32>
    tpu.vector_store %arg14[%c0_109, %c0_110], %311 {strides = array<i32>} : memref<22x32xf32, #tpu.memory_space<vmem>>, vector<22x32xf32>,
    return
  }
  func.func @transform_0(%arg0: i32) -> (i32, i32) {
    %c0_i32 = arith.constant 0 : i32
    %c0_i32_0 = arith.constant 0 : i32
    %c0_i32_1 = arith.constant 0 : i32
    return %c0_i32, %c0_i32_0 : i32, i32
  }
  func.func @transform_1(%arg0: i32) -> (i32, i32) {
    %c0_i32 = arith.constant 0 : i32
    %c0_i32_0 = arith.constant 0 : i32
    %c0_i32_1 = arith.constant 0 : i32
    return %c0_i32, %c0_i32_0 : i32, i32
  }
  func.func @transform_2(%arg0: i32) -> (i32, i32) {
    %c0_i32 = arith.constant 0 : i32
    %c0_i32_0 = arith.constant 0 : i32
    %c0_i32_1 = arith.constant 0 : i32
    return %c0_i32, %c0_i32_0 : i32, i32
  }
  func.func @transform_3(%arg0: i32) -> (i32, i32) {
    %c0_i32 = arith.constant 0 : i32
    %c0_i32_0 = arith.constant 0 : i32
    %c0_i32_1 = arith.constant 0 : i32
    return %c0_i32, %c0_i32_0 : i32, i32
  }
  func.func @transform_4(%arg0: i32) -> (i32, i32) {
    %c0_i32 = arith.constant 0 : i32
    %c0_i32_0 = arith.constant 0 : i32
    %c0_i32_1 = arith.constant 0 : i32
    return %c0_i32, %c0_i32_0 : i32, i32
  }
  func.func @transform_5(%arg0: i32) -> (i32, i32) {
    %c0_i32 = arith.constant 0 : i32
    %c0_i32_0 = arith.constant 0 : i32
    %c0_i32_1 = arith.constant 0 : i32
    return %c0_i32, %c0_i32_0 : i32, i32
  }
  func.func @transform_6(%arg0: i32) -> (i32, i32) {
    %c0_i32 = arith.constant 0 : i32
    %c0_i32_0 = arith.constant 0 : i32
    %c0_i32_1 = arith.constant 0 : i32
    return %c0_i32, %c0_i32_0 : i32, i32
  }
  func.func @transform_7(%arg0: i32) -> (i32, i32) {
    %c0_i32 = arith.constant 0 : i32
    %c0_i32_0 = arith.constant 0 : i32
    %c0_i32_1 = arith.constant 0 : i32
    return %c0_i32, %c0_i32_0 : i32, i32
  }
  func.func @transform_8(%arg0: i32) -> (i32, i32) {
    %c0_i32 = arith.constant 0 : i32
    %c0_i32_0 = arith.constant 0 : i32
    %c0_i32_1 = arith.constant 0 : i32
    return %c0_i32, %c0_i32_0 : i32, i32
  }
  func.func @transform_9(%arg0: i32) -> (i32, i32) {
    %c0_i32 = arith.constant 0 : i32
    %c0_i32_0 = arith.constant 0 : i32
    %c0_i32_1 = arith.constant 0 : i32
    return %c0_i32, %c0_i32_0 : i32, i32
  }
  func.func @transform_10(%arg0: i32) -> (i32, i32) {
    %c0_i32 = arith.constant 0 : i32
    %c0_i32_0 = arith.constant 0 : i32
    %c0_i32_1 = arith.constant 0 : i32
    return %c0_i32, %c0_i32_0 : i32, i32
  }
  func.func @transform_11(%arg0: i32) -> (i32, i32) {
    %c0_i32 = arith.constant 0 : i32
    %c0_i32_0 = arith.constant 0 : i32
    %c0_i32_1 = arith.constant 0 : i32
    return %c0_i32, %c0_i32_0 : i32, i32
  }
  func.func @transform_12(%arg0: i32) -> (i32, i32) {
    %c0_i32 = arith.constant 0 : i32
    %c0_i32_0 = arith.constant 0 : i32
    %c0_i32_1 = arith.constant 0 : i32
    return %c0_i32, %c0_i32_0 : i32, i32
  }
  func.func @transform_13(%arg0: i32) -> (i32, i32) {
    %c0_i32 = arith.constant 0 : i32
    %c0_i32_0 = arith.constant 0 : i32
    %c0_i32_1 = arith.constant 0 : i32
    return %c0_i32, %c0_i32_0 : i32, i32
  }
}

</mosaic_0001>

<bundles_post_ra>
// kernel: tpu_custom_call.1
= control target key start
LH: loop header
LB: loop body
LE: loop exit
PB: predicated region body
PF: predicated region fallthrough
CT: control target
= control target key end

     0   :  { %18 = vsyncpa [#allocation4], 0  ;;  %s3309_s0 = inlined_call_operand.hbm [shape: f32[22,32], index: 0, kind: input, shape index: {}, may-alias: {0,13}]   ;;  %s3310_s1 = inlined_call_operand.hbm [shape: f32[1,32], index: 1, kind: input, shape index: {}]   ;;  %s3311_s2 = inlined_call_operand.hbm [shape: f32[1,32], index: 2, kind: input, shape index: {}]   ;;  %s3312_s3 = inlined_call_operand.hbm [shape: bf16[32,96], index: 3, kind: input, shape index: {}]   ;;  %s3313_s4 = inlined_call_operand.hbm [shape: f32[1,96], index: 4, kind: input, shape index: {}]   ;;  %s3314_s5 = inlined_call_operand.hbm [shape: bf16[32,32], index: 5, kind: input, shape index: {}]   ;;  %s3315_s6 = inlined_call_operand.hbm [shape: f32[1,32], index: 6, kind: input, shape index: {}]   ;;  %s3316_s7 = inlined_call_operand.hbm [shape: f32[1,32], index: 7, kind: input, shape index: {}]   ;;  %s3317_s8 = inlined_call_operand.hbm [shape: f32[1,32], index: 8, kind: input, shape index: {}]   ;;  %s3318_s9 = inlined_call_operand.hbm [shape: bf16[32,128], index: 9, kind: input, shape index: {}]   ;;  %s3319_s10 = inlined_call_operand.hbm [shape: f32[1,128], index: 10, kind: input, shape index: {}]   ;;  %s3320_s11 = inlined_call_operand.hbm [shape: bf16[128,32], index: 11, kind: input, shape index: {}]   ;;  %s3321_s12 = inlined_call_operand.hbm [shape: f32[1,32], index: 12, kind: input, shape index: {}]   ;;  %s3322_s13 = inlined_call_operand.hbm [shape: f32[22,32], index: 13, kind: output, shape index: {}, may-alias: {0,13}]  }
   0x1   :  { %19 = vsyncpa [#allocation7], 0 }
   0x2   :  { %20 = vsyncpa [#allocation10], 0 }
   0x3   :  { %21 = vsyncpa [#allocation13], 0 }
   0x4   :  { %22 = vsyncpa [#allocation16], 0 }
   0x5   :  { %23 = vsyncpa [#allocation19], 0 }
   0x6   :  { %24 = vsyncpa [#allocation22], 0 }
   0x7   :  { %25 = vsyncpa [#allocation5], 0  ;;  %s2616_s25 = smov [#allocation6]   ;;  %s2617_s27 = smov [#allocation9]  }
   0x8   :  { %s44_s26 = sshll.u32 %s2616_s25, 4  ;;  %s63_s28 = sshll.u32 %s2617_s27, 4  ;;  %s45_s26 = int_to_ptr.vmem [resolvable:$true] %s44_s26  ;;  %s2721_s28 = int_to_ptr.vmem [resolvable:$true] %s63_s28 }
   0x9   :  { %s2292_s14 = scalar_lea.hbm %s3310_s1, 16 }
   0xa   :  { %p2293_p0 = scmp.ne.s32.totalorder %s3310_s1, %s2292_s14  ;;  %p2296_p1 = scmp.lt.u32.totalorder %s2292_s14, %s3310_s1 }
   0xc   :  { %p2298_p2 = pnand %p2296_p1, %p2293_p0 }
   0xe   :  { %2301 = shalt.err (!%p2298_p2)
}
   0xf   :  { %s2302_s19 = scalar_lea.vmem %s45_s26, 16  ;;  %s2306_s20 = scalar_lea.vmem %s45_s26, 32 }
  0x10   :  { %p2303_p3 = scmp.ne.s32.totalorder %s45_s26, %s2302_s19  ;;  %p2307_p4 = scmp.lt.s32.totalorder %s45_s26, %s45_s26 }
  0x11   :  { %p2308_p5 = scmp.lt.s32.totalorder %s2306_s20, %s2302_s19 }
  0x13   :  { %p2309_p6 = por %p2308_p5, %p2307_p4 }
  0x15   :  { %p2310_p7 = pnand %p2309_p6, %p2303_p3 }
  0x17   :  { %2313 = shalt.err (!%p2310_p7)
}
  0x18   :  { %47 = dma.hbm_to_vmem [thread:$0]  %s3310_s1, 16, %s45_s26, [#allocation7]  }
  0x19   :  { %s2314_s25 = scalar_lea.hbm %s3312_s3, 256 }
  0x1a   :  { %p2315_p8 = scmp.ne.s32.totalorder %s3312_s3, %s2314_s25  ;;  %p2318_p9 = scmp.lt.u32.totalorder %s2314_s25, %s3312_s3 }
  0x1c   :  { %p2320_p10 = pnand %p2318_p9, %p2315_p8 }
  0x1e   :  { %2323 = shalt.err (!%p2320_p10)
}
  0x1f   :  { %s2324_s15 = scalar_lea.vmem %s2721_s28, 256  ;;  %p2329_p12 = scmp.lt.s32.totalorder %s2721_s28, %s2721_s28 }
  0x20   :  { %p2325_p11 = scmp.ne.s32.totalorder %s2721_s28, %s2324_s15  ;;  %p2330_p13 = scmp.lt.s32.totalorder %s2324_s15, %s2324_s15 }
  0x22   :  { %p2331_p0 = por %p2330_p13, %p2329_p12 }
  0x24   :  { %p2332_p1 = pnand %p2331_p0, %p2325_p11 }
  0x26   :  { %2335 = shalt.err (!%p2332_p1)
}
  0x27   :  { %s2618_s1 = smov 64   ;;  %s2619_s26 = smov 4  }
  0x28   :  { %69 = dma.hbm_to_vmem [thread:$0]  %s3312_s3, 256, %s2721_s28, [#allocation10], %s2618_s1, %s2618_s1, %s2619_s26  }
  0x29   :  { %s2620_s18 = smov [#allocation12]   ;;  %s2621_s20 = smov [#allocation15]  }
  0x2a   :  { %s85_s19 = sshll.u32 %s2620_s18, 4  ;;  %s108_s21 = sshll.u32 %s2621_s20, 4  ;;  %s86_s19 = int_to_ptr.vmem [resolvable:$true] %s85_s19  ;;  %s109_s21 = int_to_ptr.vmem [resolvable:$true] %s108_s21 }
  0x2b   :  { %s2336_s24 = scalar_lea.hbm %s3314_s5, 256 }
  0x2c   :  { %p2337_p2 = scmp.ne.s32.totalorder %s3314_s5, %s2336_s24  ;;  %p2340_p3 = scmp.lt.u32.totalorder %s2336_s24, %s3314_s5 }
  0x2e   :  { %p2342_p4 = pnand %p2340_p3, %p2337_p2 }
  0x30   :  { %2345 = shalt.err (!%p2342_p4)
}
  0x31   :  { %s2346_s3 = scalar_lea.vmem %s86_s19, 256  ;;  %p2351_p6 = scmp.lt.s32.totalorder %s86_s19, %s86_s19 }
  0x32   :  { %p2347_p5 = scmp.ne.s32.totalorder %s86_s19, %s2346_s3  ;;  %p2352_p7 = scmp.lt.s32.totalorder %s2346_s3, %s2346_s3 }
  0x34   :  { %p2353_p8 = por %p2352_p7, %p2351_p6 }
  0x36   :  { %p2354_p9 = pnand %p2353_p8, %p2347_p5 }
  0x38   :  { %2357 = shalt.err (!%p2354_p9)
}
  0x39   :  { %91 = dma.hbm_to_vmem [thread:$0]  %s3314_s5, 256, %s86_s19, [#allocation13], %s2618_s1, %s2618_s1, %s2619_s26  }
  0x3a   :  { %s2358_s17 = scalar_lea.hbm %s3316_s7, 16 }
  0x3b   :  { %p2359_p10 = scmp.ne.s32.totalorder %s3316_s7, %s2358_s17  ;;  %p2362_p11 = scmp.lt.u32.totalorder %s2358_s17, %s3316_s7 }
  0x3d   :  { %p2364_p12 = pnand %p2362_p11, %p2359_p10 }
  0x3f   :  { %2367 = shalt.err (!%p2364_p12)
}
  0x40   :  { %s2368_s24 = scalar_lea.vmem %s109_s21, 16  ;;  %s2372_s25 = scalar_lea.vmem %s109_s21, 32 }
  0x41   :  { %p2369_p13 = scmp.ne.s32.totalorder %s109_s21, %s2368_s24  ;;  %p2373_p0 = scmp.lt.s32.totalorder %s109_s21, %s109_s21 }
  0x42   :  { %p2374_p1 = scmp.lt.s32.totalorder %s2372_s25, %s2368_s24 }
  0x44   :  { %p2375_p2 = por %p2374_p1, %p2373_p0 }
  0x46   :  { %p2376_p3 = pnand %p2375_p2, %p2369_p13 }
  0x48   :  { %2379 = shalt.err (!%p2376_p3)
}
  0x49   :  { %111 = dma.hbm_to_vmem [thread:$0]  %s3316_s7, 16, %s109_s21, [#allocation16]  }
  0x4a   :  { %s2622_s27 = smov [#allocation18]   ;;  %s2623_s30 = smov [#allocation21]  }
  0x4b   :  { %s127_s29 = sshll.u32 %s2622_s27, 4  ;;  %s149_s3 = sshll.u32 %s2623_s30, 4  ;;  %s128_s29 = int_to_ptr.vmem [resolvable:$true] %s127_s29  ;;  %s2782_s3 = int_to_ptr.vmem [resolvable:$true] %s149_s3 }
  0x4c   :  { %s2380_s15 = scalar_lea.hbm %s3318_s9, 256 }
  0x4d   :  { %p2381_p4 = scmp.ne.s32.totalorder %s3318_s9, %s2380_s15  ;;  %p2384_p5 = scmp.lt.u32.totalorder %s2380_s15, %s3318_s9 }
  0x4f   :  { %p2386_p6 = pnand %p2384_p5, %p2381_p4 }
  0x51   :  { %2389 = shalt.err (!%p2386_p6)
}
  0x52   :  { %s2390_s7 = scalar_lea.vmem %s128_s29, 256  ;;  %p2395_p8 = scmp.lt.s32.totalorder %s128_s29, %s128_s29 }
  0x53   :  { %p2391_p7 = scmp.ne.s32.totalorder %s128_s29, %s2390_s7  ;;  %p2396_p9 = scmp.lt.s32.totalorder %s2390_s7, %s2390_s7 }
  0x55   :  { %p2397_p10 = por %p2396_p9, %p2395_p8 }
  0x57   :  { %p2398_p11 = pnand %p2397_p10, %p2391_p7 }
  0x59   :  { %2401 = shalt.err (!%p2398_p11)
}
  0x5a   :  { %133 = dma.hbm_to_vmem [thread:$0]  %s3318_s9, 256, %s128_s29, [#allocation19], %s2618_s1, %s2618_s1, %s2619_s26  }
  0x5b   :  { %s2402_s25 = scalar_lea.hbm %s3320_s11, 1024 }
  0x5c   :  { %p2403_p12 = scmp.ne.s32.totalorder %s3320_s11, %s2402_s25  ;;  %p2406_p13 = scmp.lt.u32.totalorder %s2402_s25, %s3320_s11 }
  0x5e   :  { %p2408_p0 = pnand %p2406_p13, %p2403_p12 }
  0x60   :  { %2411 = shalt.err (!%p2408_p0)
}
  0x61   :  { %s2412_s28 = scalar_lea.vmem %s2782_s3, 1024  ;;  %p2417_p2 = scmp.lt.s32.totalorder %s2782_s3, %s2782_s3 }
  0x62   :  { %p2413_p1 = scmp.ne.s32.totalorder %s2782_s3, %s2412_s28  ;;  %p2418_p3 = scmp.lt.s32.totalorder %s2412_s28, %s2412_s28 }
  0x64   :  { %p2419_p4 = por %p2418_p3, %p2417_p2 }
  0x66   :  { %p2420_p5 = pnand %p2419_p4, %p2413_p1 }
  0x68   :  { %2423 = shalt.err (!%p2420_p5)
}
  0x69   :  { %155 = dma.hbm_to_vmem [thread:$0]  %s3320_s11, 1024, %s2782_s3, [#allocation22], %s2618_s1, %s2618_s1, %s2619_s26  }
  0x6a   :  { %s2624_s14 = smov [#allocation3]   ;;  %s2424_s18 = scalar_lea.hbm %s3309_s0, 384 }
  0x6b   :  { %s31_s15 = sshll.u32 %s2624_s14, 4  ;;  %p2425_p6 = scmp.ne.s32.totalorder %s3309_s0, %s2424_s18  ;;  %s32_s15 = int_to_ptr.vmem [resolvable:$true] %s31_s15 }
  0x6c   :  { %p2428_p7 = scmp.lt.u32.totalorder %s2424_s18, %s3309_s0 }
  0x6e   :  { %p2430_p8 = pnand %p2428_p7, %p2425_p6 }
  0x70   :  { %2433 = shalt.err (!%p2430_p8)
}
  0x71   :  { %s2434_s23 = scalar_lea.vmem %s32_s15, 384  ;;  %p2439_p10 = scmp.lt.s32.totalorder %s32_s15, %s32_s15 }
  0x72   :  { %p2435_p9 = scmp.ne.s32.totalorder %s32_s15, %s2434_s23  ;;  %p2440_p11 = scmp.lt.s32.totalorder %s2434_s23, %s2434_s23 }
  0x74   :  { %p2441_p12 = por %p2440_p11, %p2439_p10 }
  0x76   :  { %p2442_p13 = pnand %p2441_p12, %p2435_p9 }
  0x78   :  { %2445 = shalt.err (!%p2442_p13)
}
  0x79   :  { %s2625_s11 = smov 128   ;;  %s2626_s26 = smov 8  }
  0x7a   :  { %37 = dma.hbm_to_vmem [thread:$0]  %s3309_s0, 384, %s32_s15, [#allocation4], %s2625_s11, %s2625_s11, %s2626_s26  }
  0x7b   :  { %s2627_s25 = smov [#allocation8]   ;;  %s2628_s19 = smov [#allocation11]  }
  0x7c   :  { %s54_s5 = sshll.u32 %s2627_s25, 4  ;;  %s76_s27 = sshll.u32 %s2628_s19, 4  ;;  %s55_s5 = int_to_ptr.vmem [resolvable:$true] %s54_s5  ;;  %s77_s27 = int_to_ptr.vmem [resolvable:$true] %s76_s27 }
  0x7d   :  { %s2446_s9 = scalar_lea.hbm %s3311_s2, 16 }
  0x7e   :  { %p2447_p0 = scmp.ne.s32.totalorder %s3311_s2, %s2446_s9  ;;  %p2450_p1 = scmp.lt.u32.totalorder %s2446_s9, %s3311_s2 }
  0x80   :  { %p2452_p2 = pnand %p2450_p1, %p2447_p0 }
  0x82   :  { %2455 = shalt.err (!%p2452_p2)
}
  0x83   :  { %s2456_s0 = scalar_lea.vmem %s55_s5, 16  ;;  %s2460_s15 = scalar_lea.vmem %s55_s5, 32 }
  0x84   :  { %p2457_p3 = scmp.ne.s32.totalorder %s55_s5, %s2456_s0  ;;  %p2461_p4 = scmp.lt.s32.totalorder %s55_s5, %s55_s5 }
  0x85   :  { %p2462_p5 = scmp.lt.s32.totalorder %s2460_s15, %s2456_s0 }
  0x87   :  { %p2463_p6 = por %p2462_p5, %p2461_p4 }
  0x89   :  { %p2464_p7 = pnand %p2463_p6, %p2457_p3 }
  0x8b   :  { %2467 = shalt.err (!%p2464_p7)
}
  0x8c   :  { %57 = dma.hbm_to_vmem [thread:$0]  %s3311_s2, 16, %s55_s5, [#allocation7]  }
  0x8d   :  { %s2468_s22 = scalar_lea.hbm %s3313_s4, 16 }
  0x8e   :  { %p2469_p8 = scmp.ne.s32.totalorder %s3313_s4, %s2468_s22  ;;  %p2472_p9 = scmp.lt.u32.totalorder %s2468_s22, %s3313_s4 }
  0x90   :  { %p2474_p10 = pnand %p2472_p9, %p2469_p8 }
  0x92   :  { %2477 = shalt.err (!%p2474_p10)
}
  0x93   :  { %s2478_s19 = scalar_lea.vmem %s77_s27, 16  ;;  %s2482_s30 = scalar_lea.vmem %s77_s27, 32 }
  0x94   :  { %p2479_p11 = scmp.ne.s32.totalorder %s77_s27, %s2478_s19  ;;  %p2483_p12 = scmp.lt.s32.totalorder %s77_s27, %s77_s27 }
  0x95   :  { %p2484_p13 = scmp.lt.s32.totalorder %s2482_s30, %s2478_s19 }
  0x97   :  { %p2485_p0 = por %p2484_p13, %p2483_p12 }
  0x99   :  { %p2486_p1 = pnand %p2485_p0, %p2479_p11 }
  0x9b   :  { %2489 = shalt.err (!%p2486_p1)
}
  0x9c   :  { %79 = dma.hbm_to_vmem [thread:$0]  %s3313_s4, 16, %s77_s27, [#allocation10]  }
  0x9d   :  { %s2629_s28 = smov [#allocation14]   ;;  %s2630_s29 = smov [#allocation17]  }
  0x9e   :  { %s98_s9 = sshll.u32 %s2629_s28, 4  ;;  %s118_s14 = sshll.u32 %s2630_s29, 4  ;;  %s99_s9 = int_to_ptr.vmem [resolvable:$true] %s98_s9  ;;  %s119_s14 = int_to_ptr.vmem [resolvable:$true] %s118_s14 }
  0x9f   :  { %s2490_s0 = scalar_lea.hbm %s3315_s6, 16 }
  0xa0   :  { %p2491_p2 = scmp.ne.s32.totalorder %s3315_s6, %s2490_s0  ;;  %p2494_p3 = scmp.lt.u32.totalorder %s2490_s0, %s3315_s6 }
  0xa2   :  { %p2496_p4 = pnand %p2494_p3, %p2491_p2 }
  0xa4   :  { %2499 = shalt.err (!%p2496_p4)
}
  0xa5   :  { %s2500_s4 = scalar_lea.vmem %s99_s9, 16  ;;  %s2504_s27 = scalar_lea.vmem %s99_s9, 32 }
  0xa6   :  { %p2501_p5 = scmp.ne.s32.totalorder %s99_s9, %s2500_s4  ;;  %p2505_p6 = scmp.lt.s32.totalorder %s99_s9, %s99_s9 }
  0xa7   :  { %p2506_p7 = scmp.lt.s32.totalorder %s2504_s27, %s2500_s4 }
  0xa9   :  { %p2507_p8 = por %p2506_p7, %p2505_p6 }
  0xab   :  { %p2508_p9 = pnand %p2507_p8, %p2501_p5 }
  0xad   :  { %2511 = shalt.err (!%p2508_p9)
}
  0xae   :  { %101 = dma.hbm_to_vmem [thread:$0]  %s3315_s6, 16, %s99_s9, [#allocation13]  }
  0xaf   :  { %s2512_s24 = scalar_lea.hbm %s3317_s8, 16 }
  0xb0   :  { %p2513_p10 = scmp.ne.s32.totalorder %s3317_s8, %s2512_s24  ;;  %p2516_p11 = scmp.lt.u32.totalorder %s2512_s24, %s3317_s8 }
  0xb2   :  { %p2518_p12 = pnand %p2516_p11, %p2513_p10 }
  0xb4   :  { %2521 = shalt.err (!%p2518_p12)
}
  0xb5   :  { %s2522_s5 = scalar_lea.vmem %s119_s14, 16  ;;  %s2526_s28 = scalar_lea.vmem %s119_s14, 32 }
  0xb6   :  { %p2523_p13 = scmp.ne.s32.totalorder %s119_s14, %s2522_s5  ;;  %p2527_p0 = scmp.lt.s32.totalorder %s119_s14, %s119_s14 }
  0xb7   :  { %p2528_p1 = scmp.lt.s32.totalorder %s2526_s28, %s2522_s5 }
  0xb9   :  { %p2529_p2 = por %p2528_p1, %p2527_p0 }
  0xbb   :  { %p2530_p3 = pnand %p2529_p2, %p2523_p13 }
  0xbd   :  { %2533 = shalt.err (!%p2530_p3)
}
  0xbe   :  { %121 = dma.hbm_to_vmem [thread:$0]  %s3317_s8, 16, %s119_s14, [#allocation16]  }
  0xbf   :  { %s2631_s29 = smov [#allocation20]   ;;  %s2632_s17 = smov [#allocation23]  }
  0xc0   :  { %s140_s16 = sshll.u32 %s2631_s29, 4  ;;  %s162_s0 = sshll.u32 %s2632_s17, 4  ;;  %s141_s16 = int_to_ptr.vmem [resolvable:$true] %s140_s16  ;;  %s163_s0 = int_to_ptr.vmem [resolvable:$true] %s162_s0 }
  0xc1   :  { %s2534_s20 = scalar_lea.hbm %s3319_s10, 16 }
  0xc2   :  { %p2535_p4 = scmp.ne.s32.totalorder %s3319_s10, %s2534_s20  ;;  %p2538_p5 = scmp.lt.u32.totalorder %s2534_s20, %s3319_s10 }
  0xc4   :  { %p2540_p6 = pnand %p2538_p5, %p2535_p4 }
  0xc6   :  { %2543 = shalt.err (!%p2540_p6)
}
  0xc7   :  { %s2544_s8 = scalar_lea.vmem %s141_s16, 16  ;;  %s2548_s14 = scalar_lea.vmem %s141_s16, 32 }
  0xc8   :  { %p2545_p7 = scmp.ne.s32.totalorder %s141_s16, %s2544_s8  ;;  %p2549_p8 = scmp.lt.s32.totalorder %s141_s16, %s141_s16 }
  0xc9   :  { %p2550_p9 = scmp.lt.s32.totalorder %s2548_s14, %s2544_s8 }
  0xcb   :  { %p2551_p10 = por %p2550_p9, %p2549_p8 }
  0xcd   :  { %p2552_p11 = pnand %p2551_p10, %p2545_p7 }
  0xcf   :  { %2555 = shalt.err (!%p2552_p11)
}
  0xd0   :  { %143 = dma.hbm_to_vmem [thread:$0]  %s3319_s10, 16, %s141_s16, [#allocation19]  }
  0xd1   :  { %s2556_s25 = scalar_lea.hbm %s3321_s12, 16 }
  0xd2   :  { %p2557_p12 = scmp.ne.s32.totalorder %s3321_s12, %s2556_s25  ;;  %p2560_p13 = scmp.lt.u32.totalorder %s2556_s25, %s3321_s12 }
  0xd4   :  { %p2562_p0 = pnand %p2560_p13, %p2557_p12 }
  0xd6   :  { %2565 = shalt.err (!%p2562_p0)
}
  0xd7   :  { %s2566_s28 = scalar_lea.vmem %s163_s0, 16  ;;  %s2570_s6 = scalar_lea.vmem %s163_s0, 32 }
  0xd8   :  { %p2567_p1 = scmp.ne.s32.totalorder %s163_s0, %s2566_s28  ;;  %p2571_p2 = scmp.lt.s32.totalorder %s163_s0, %s163_s0 }
  0xd9   :  { %p2572_p3 = scmp.lt.s32.totalorder %s2570_s6, %s2566_s28 }
  0xdb   :  { %p2573_p4 = por %p2572_p3, %p2571_p2 }
  0xdd   :  { %p2574_p5 = pnand %p2573_p4, %p2567_p1 }
  0xdf   :  { %2577 = shalt.err (!%p2574_p5)
}
  0xe0   :  { %165 = dma.hbm_to_vmem [thread:$0]  %s3321_s12, 16, %s163_s0, [#allocation22]  }
  0xe1   :  { %2600 = dma.done.wait [#allocation4], 384  }
  0xe2   :  { %2601 = vsyncadd [#allocation4], 4294966912 }
  0xe3   :  { %2602 = dma.done.wait [#allocation7], 32  }
  0xe4   :  { %2603 = vsyncadd [#allocation7], 4294967264 }
  0xe5   :  { %2604 = dma.done.wait [#allocation10], 272  }
  0xe6   :  { %2605 = vsyncadd [#allocation10], 4294967024 }
  0xe7   :  { %2606 = dma.done.wait [#allocation13], 272  }
  0xe8   :  { %2607 = vsyncadd [#allocation13], 4294967024 }
  0xe9   :  { %2608 = dma.done.wait [#allocation16], 32  }
  0xea   :  { %2609 = vsyncadd [#allocation16], 4294967264 }
  0xeb   :  { %2610 = dma.done.wait [#allocation19], 272  }
  0xec   :  { %2611 = vsyncadd [#allocation19], 4294967024 }
  0xed   :  { %2612 = dma.done.wait [#allocation22], 1040  }
  0xee   :  { %2613 = vsyncadd [#allocation22], 4294966256  ;;  %vm211_vm0 = vcmask 261120   ;;  %vm218_vm1 = vcmask 259072   ;;  %v206_v0 = vld [vmem:[#allocation3] sm:$0xff]  ;;  %v207_v2 = vld [vmem:[#allocation3 + $0x8] sm:$0xff] }
  0xef   :  { %v208_v1 = vld [vmem:[#allocation3 + $0x10] sm:$0x3f]  ;;  %v212_v3 = vsel %vm211_vm0, %v206_v0, 0.0  ;;  %v215_v5 = vsel %vm211_vm0, %v207_v2, 0.0  ;;  %v2187_v21 = vld [vmem:[#allocation9] sm:$0xff]   ;;  %v2188_v22 = vld [vmem:[#allocation9 + $0x8] sm:$0xff]  }
  0xf0   :  { %v219_v4 = vsel %vm218_vm1, %v208_v1, 0.0  ;;  %213 = vadd.xlane.f32.xlu0 %v212_v3  ;;  %2012 = vmatprep.subr.bf16.mxu0 %v2187_v21  ;;  %v1914_v34 = vld [vmem:[#allocation6] ss:$0 sm:$0xff]  ;;  %v1915_v40 = vld [vmem:[#allocation8] ss:$0 sm:$0xff]  ;;  %v2633_v48 = vmov 0.0  }
  0xf1   :  { %220 = vadd.xlane.f32.xlu1 %v219_v4  ;;  %2013 = vmatpush3.bf16.msra.mxu0 %v2187_v21  ;;  %vm2634_vm2 = vmmov 0   ;;  %v1916_v50 = vld [vmem:[#allocation11] ss:$0 sm:$0xff]  ;;  %s2635_s12 = smov 88   ;;  %s2636_s29 = smov 96   ;;  %vm366_vm3 = vcmask 64512  }
  0xf2   :  { %2014 = vmatprep.subr.bf16.mxu0 %v2188_v22  ;;  %2032 = vmatprep.subr.bf16.mxu1 %v2633_v48  ;;  %s2637_s16 = smov 120   ;;  %s2638_s17 = smov 112   ;;  %vm448_vm4 = vcmask 1044480   ;;  %vm449_vm5 = vcmask 1045504   ;;  %vm418_vm11 = vcmask 89088   ;;  %vm422_vm12 = vcmask 83968  }
  0xf3   :  { %2034 = vmatprep.mubr.msk.bf16.mxu1 %vm2634_vm2, %v2633_v48  ;;  %s2639_s0 = smov 80   ;;  %s2640_s15 = smov 104   ;;  %vm497_vm13 = vcmask 59392   ;;  %vm634_vm14 = vcmask 130112   ;;  %vm636_vm15 = vcmask 124992  }
  0xf4   :  { %216 = vadd.xlane.f32.xlu0 %v215_v5  ;;  %s2641_s18 = smov 72   ;;  %s2644_s20 = smov 56  }
  0xf5   :  { %2015 = vmatpush3.bf16.msra.mxu0 %v2188_v22  ;;  %s2645_s7 = smov 48   ;;  %s2646_s4 = smov 40  }
  0xf6   :  { %2020 = vmatprep.subr.bf16.mxu0 %v2633_v48  ;;  %s2648_s27 = smov 24   ;;  %s2650_s21 = smov [#allocation24]  }
  0xf7   :  { %s1896_s8 = sshll.u32 %s2650_s21, 4  ;;  %s1897_s8 = int_to_ptr.vmem [resolvable:$true] %s1896_s8 }
  0xf8   :  { %s2578_s14 = scalar_lea.vmem %s1897_s8, 384  ;;  %p2583_p7 = scmp.lt.s32.totalorder %s1897_s8, %s1897_s8 }
  0xf9   :  { %p2579_p6 = scmp.ne.s32.totalorder %s1897_s8, %s2578_s14  ;;  %p2584_p8 = scmp.lt.s32.totalorder %s2578_s14, %s2578_s14 }
  0xfb   :  { %p2585_p9 = por %p2584_p8, %p2583_p7 }
  0xfd   :  { %p2586_p10 = pnand %p2585_p9, %p2579_p6 }
 0x17d   :  { %v214_v6 = vpop.xlane.xlu0 %213 }
 0x17e   :  { %v221_v7 = vpop.xlane.xlu1 %220  ;;  %v223_v8 = vmul.f32 0.03125, %v214_v6 }
 0x17f   :  { %v225_v9 = vmul.f32 0.03125, %v221_v7 }
 0x180   :  { %v226_v10 = vsub.f32 %v206_v0, %v223_v8 }
 0x181   :  { %v228_v11 = vsub.f32 %v208_v1, %v225_v9  ;;  %v217_v12 = vpop.xlane.xlu0 %216 }
 0x182   :  { %v224_v13 = vmul.f32 0.03125, %v217_v12  ;;  %v229_v14 = vmul.f32 %v226_v10, %v226_v10 }
 0x183   :  { %v231_v15 = vmul.f32 %v228_v11, %v228_v11 }
 0x184   :  { %v227_v16 = vsub.f32 %v207_v2, %v224_v13  ;;  %v232_v17 = vsel %vm211_vm0, %v229_v14, 0.0  ;;  %v2642_v13 = vmov 65535  }
 0x185   :  { %233 = vadd.xlane.f32.xlu1 %v232_v17  ;;  %v238_v18 = vsel %vm218_vm1, %v231_v15, 0.0  ;;  %v450_v14 = vsel %vm448_vm4, 4294967295, %v2642_v13  ;;  %vm912_vm4 = vcmask 261312  }
 0x186   :  { %v230_v19 = vmul.f32 %v227_v16, %v227_v16  ;;  %v2958_v17 = vsel %vm449_vm5, %v450_v14, 0  ;;  %vm914_vm5 = vcmask 256192  }
 0x188   :  { %v235_v20 = vsel %vm211_vm0, %v230_v19, 0.0 }
 0x189   :  { %239 = vadd.xlane.f32.xlu1 %v238_v18  ;;  %236 = vadd.xlane.f32.xlu0 %v235_v20 }
 0x212   :  { %v234_v23 = vpop.xlane.xlu1 %233 }
 0x213   :  { %v241_v24 = vmul.f32 0.03125, %v234_v23 }
 0x215   :  { %v244_v25 = vadd.f32 1e-05, %v241_v24 }
 0x216   :  { %v240_v26 = vpop.xlane.xlu1 %239  ;;  %v237_v27 = vpop.xlane.xlu0 %236 }
 0x217   :  { %2201 = vrsqrt.f32 %v244_v25  ;;  %v243_v28 = vmul.f32 0.03125, %v240_v26  ;;  %v242_v29 = vmul.f32 0.03125, %v237_v27  ;;  %v350_v27 = vlaneseq }
 0x219   :  { %v246_v30 = vadd.f32 1e-05, %v243_v28  ;;  %v245_v31 = vadd.f32 1e-05, %v242_v29  ;;  %v351_v28 = vshrl.u32 %v350_v27, 7  ;;  %v354_v29 = vand.u32 127, %v350_v27 }
 0x21b   :  { %2203 = vrsqrt.f32 %v246_v30  ;;  %v352_v30 = vadd.s32 8, %v351_v28  ;;  %vm355_vm6 = vcmp.le.s32.totalorder %v354_v29, %v351_v28  ;;  %vm357_vm7 = vcmp.ne.s32.totalorder %v354_v29, 5 }
 0x21c   :  { %2205 = vrsqrt.f32 %v245_v31  ;;  %vm358_vm9 = vmand %vm355_vm6, %vm357_vm7 }
 0x21d   :  { %vm356_vm8 = vcmp.le.s32.totalorder %v354_v29, %v352_v30 }
 0x21e   :  { %vm359_vm10 = vmand %vm356_vm8, %vm357_vm7 }
 0x221   :  { %v2202_v32 = vpop.eup %2201 }
 0x222   :  { %v250_v33 = vmul.f32 %v2202_v32, %v226_v10 }
 0x224   :  { %v259_v39 = vmul.f32 %v1914_v34, %v250_v33  ;;  %v2643_v33 = vmov -1e+30  }
 0x225   :  { %v2204_v35 = vpop.eup %2203 }
 0x226   :  { %v2206_v36 = vpop.eup %2205  ;;  %v252_v37 = vmul.f32 %v2204_v35, %v228_v11  ;;  %v268_v44 = vadd.f32 %v1915_v40, %v259_v39 }
 0x227   :  { %v251_v38 = vmul.f32 %v2206_v36, %v227_v16 }
 0x228   :  { %v261_v41 = vmul.f32 %v1914_v34, %v252_v37 }
 0x229   :  { %v260_v42 = vmul.f32 %v1914_v34, %v251_v38  ;;  %v2983_v34 = vsel %vm358_vm9, 0.0, %v2643_v33 }
 0x22a   :  { %v270_v43 = vadd.f32 %v1915_v40, %v261_v41  ;;  %v2985_v41 = vsel %vm359_vm10, 0.0, %v2643_v33 }
 0x22b   :  { %v269_v45 = vadd.f32 %v1915_v40, %v260_v42 }
 0x22c   :  { %v272_v46 = vpack.c.bf16 %v270_v43, %v270_v43 }
 0x22d   :  { %v271_v47 = vpack.c.bf16 %v269_v45, %v268_v44 }
 0x22f   :  { %2016 = vmatprep.mubr.msk.bf16.mxu0 %vm211_vm0, %v271_v47 }
 0x230   :  { %2017 = vmatmul.mubr.msk.bf16.vlgmr.msra.gmra.mrb[0].mxu0 %vm211_vm0, %v272_v46 }
 0x231   :  { %2022 = vmatprep.mubr.msk.bf16.mxu0 %vm2634_vm2, %v2633_v48 }
 0x303   :  { %v2018_v49 = vpop.f32.mrb[0].mxu0 }
 0x304   :  { %v336_v51 = vpop.f32.mrb[1].mxu0  ;;  %v345_v54 = vadd.f32 %v2018_v49, %v1916_v50 }
 0x305   :  { %v2019_v52 = vpop.f32.mrb[2].mxu0  ;;  %v337_v55 = vadd.f32 %v1916_v50, %v336_v51 }
 0x306   :  { %v339_v53 = vpop.f32.mrb[3].mxu0 }
 0x307   :  { %v340_v56 = vadd.f32 %v1916_v50, %v339_v53 }
 0x309   :  { %v2920_v57 = vpack.c.bf16 %v340_v56, %v337_v55  ;;  %v916_v58 = vpack.c.bf16 %v345_v54, %v340_v56 }
 0x30b   :  { %501 = vrot.lane.b32.xlu1 %v2920_v57, %s2635_s12  ;;  %364 = vrot.lane.b32.xlu0 %v2920_v57, %s2636_s29  ;;  %v918_v59 = vshrl.u32 %v916_v58, 16  ;;  %v921_v60 = vshll.u32 %v916_v58, 16 }
 0x30d   :  { %v920_v61 = vrot.slane %v918_v59, 1  ;;  %v923_v62 = vrot.slane %v921_v60, 2 }
 0x30f   :  { %499 = vrot.lane.b32.xlu1 %v2920_v57, %s2637_s16  ;;  %638 = vrot.lane.b32.xlu0 %v2920_v57, %s2638_s17  ;;  %v2928_v63 = vor.u32 %v923_v62, %v920_v61 }
 0x313   :  { %640 = vrot.lane.b32.xlu1 %v2920_v57, %s2639_s0  ;;  %777 = vrot.lane.b32.xlu0 %v2920_v57, %s2640_s15 }
 0x317   :  { %779 = vrot.lane.b32.xlu1 %v2920_v57, %s2641_s18  ;;  %1054 = vrot.lane.b32.xlu0 %v2928_v63, %s2635_s12 }
 0x31b   :  { %925 = vrot.lane.b32.xlu1 %v2928_v63, %s2636_s29  ;;  %1191 = vrot.lane.b32.xlu0 %v2928_v63, %s2639_s0 }
 0x31f   :  { %1052 = vrot.lane.b32.xlu1 %v2928_v63, %s2637_s16  ;;  %1328 = vrot.lane.b32.xlu0 %v2928_v63, %s2641_s18 }
 0x323   :  { %1189 = vrot.lane.b32.xlu1 %v2928_v63, %s2638_s17  ;;  %443 = vrot.lane.b32.xlu0 %v2920_v57, %s2618_s1 }
 0x327   :  { %1326 = vrot.lane.b32.xlu1 %v2928_v63, %s2640_s15 }
 0x37d   :  { %v502_v0 = vpop.permute.xlu1 %501  ;;  %v365_v1 = vpop.permute.xlu0 %364 }
 0x37e   :  { %v371_v2 = vsel %vm366_vm3, %v365_v1, 0  ;;  %v507_v3 = vsel %vm366_vm3, %v502_v0, 0 }
 0x37f   :  { %2021 = vmatpush3.bf16.xpose.msra.mxu0 %v371_v2  ;;  %2033 = vmatpush3.bf16.xpose.msra.mxu1 %v507_v3 }
 0x380   :  { %2044 = vmatprep.subr.bf16.mxu1 %v2633_v48  ;;  %2026 = vmatprep.subr.bf16.mxu0 %v2633_v48 }
 0x381   :  { %v500_v4 = vpop.permute.xlu1 %499  ;;  %v639_v5 = vpop.permute.xlu0 %638 }
 0x385   :  { %v641_v6 = vpop.permute.xlu1 %640  ;;  %v778_v7 = vpop.permute.xlu0 %777 }
 0x386   :  { %v646_v8 = vsel %vm366_vm3, %v641_v6, 0  ;;  %2023 = vmatmul.mubr.msk.bf16.vlgmr.msra.gmra.mrb[4].mxu0 %vm366_vm3, %v2920_v57  ;;  %2035 = vmatmul.mubr.msk.bf16.vlgmr.msra.gmra.mrb[0].mxu1 %vm366_vm3, %v500_v4 }
 0x387   :  { %2045 = vmatpush3.bf16.xpose.msra.mxu1 %v646_v8  ;;  %2046 = vmatprep.mubr.msk.bf16.mxu1 %vm2634_vm2, %v2633_v48 }
 0x388   :  { %2056 = vmatprep.subr.bf16.mxu1 %v2633_v48  ;;  %2028 = vmatprep.mubr.msk.bf16.mxu0 %vm2634_vm2, %v2633_v48 }
 0x389   :  { %v1055_v9 = vpop.permute.xlu0 %1054  ;;  %v780_v10 = vpop.permute.xlu1 %779 }
 0x38a   :  { %v785_v12 = vsel %vm366_vm3, %v780_v10, 0  ;;  %v1060_v21 = vsel %vm366_vm3, %v1055_v9, 0 }
 0x38d   :  { %v1192_v11 = vpop.permute.xlu0 %1191  ;;  %v926_v16 = vpop.permute.xlu1 %925 }
 0x38e   :  { %2047 = vmatmul.mubr.msk.bf16.vlgmr.msra.gmra.mrb[4].mxu1 %vm366_vm3, %v639_v5  ;;  %v931_v19 = vsel %vm366_vm3, %v926_v16, 0  ;;  %v1197_v23 = vsel %vm366_vm3, %v1192_v11, 0 }
 0x38f   :  { %2057 = vmatpush3.bf16.xpose.msra.mxu1 %v785_v12  ;;  %2058 = vmatprep.mubr.msk.bf16.mxu1 %vm2634_vm2, %v2633_v48 }
 0x390   :  { %2068 = vmatprep.subr.bf16.mxu1 %v2633_v48 }
 0x391   :  { %v1329_v15 = vpop.permute.xlu0 %1328  ;;  %v1053_v22 = vpop.permute.xlu1 %1052 }
 0x392   :  { %v1334_v25 = vsel %vm366_vm3, %v1329_v15, 0 }
 0x395   :  { %v444_v18 = vpop.permute.xlu0 %443  ;;  %v1190_v24 = vpop.permute.xlu1 %1189 }
 0x396   :  { %v453_v20 = vand.u32 %v2958_v17, %v444_v18  ;;  %2059 = vmatmul.mubr.msk.bf16.vlgmr.msra.gmra.mrb[8].mxu1 %vm366_vm3, %v778_v7 }
 0x397   :  { %2069 = vmatpush3.bf16.xpose.msra.mxu1 %v931_v19  ;;  %2070 = vmatprep.mubr.msk.bf16.mxu1 %vm2634_vm2, %v2633_v48 }
 0x398   :  { %2027 = vmatpush3.bf16.msra.mxu0 %v453_v20  ;;  %2080 = vmatprep.subr.bf16.mxu1 %v2633_v48 }
 0x399   :  { %2038 = vmatprep.subr.bf16.mxu0 %v2633_v48  ;;  %v1327_v26 = vpop.permute.xlu1 %1326 }
 0x39e   :  { %2071 = vmatmul.mubr.msk.bf16.vlgmr.msra.gmra.mrb[12].mxu1 %vm366_vm3, %v2928_v63 }
 0x39f   :  { %2081 = vmatpush3.bf16.xpose.msra.mxu1 %v1060_v21  ;;  %2082 = vmatprep.mubr.msk.bf16.mxu1 %vm2634_vm2, %v2633_v48 }
 0x3a0   :  { %2092 = vmatprep.subr.bf16.mxu1 %v2633_v48 }
 0x3a6   :  { %2083 = vmatmul.mubr.msk.bf16.vlgmr.msra.gmra.mrb[16].mxu1 %vm366_vm3, %v1053_v22 }
 0x3a7   :  { %2093 = vmatpush3.bf16.xpose.msra.mxu1 %v1197_v23  ;;  %2094 = vmatprep.mubr.msk.bf16.mxu1 %vm2634_vm2, %v2633_v48 }
 0x3a8   :  { %2104 = vmatprep.subr.bf16.mxu1 %v2633_v48 }
 0x3ae   :  { %2095 = vmatmul.mubr.msk.bf16.vlgmr.msra.gmra.mrb[20].mxu1 %vm366_vm3, %v1190_v24 }
 0x3af   :  { %2105 = vmatpush3.bf16.xpose.msra.mxu1 %v1334_v25  ;;  %2106 = vmatprep.mubr.msk.bf16.mxu1 %vm2634_vm2, %v2633_v48 }
 0x3b6   :  { %2107 = vmatmul.mubr.msk.bf16.vlgmr.msra.gmra.mrb[24].mxu1 %vm366_vm3, %v1327_v26 }
 0x459   :  { %v407_v31 = vpop.f32.mrb[4].mxu0  ;;  %v543_v32 = vpop.f32.mrb[0].mxu1 }
 0x45a   :  { %v414_v35 = vmul.f32 0.35355338, %v407_v31  ;;  %v550_v36 = vmul.f32 0.35355338, %v543_v32  ;;  %v2024_v37 = vpop.f32.mrb[5].mxu0  ;;  %v2036_v38 = vpop.f32.mrb[1].mxu1 }
 0x45b   :  { %v410_v39 = vpop.f32.mrb[6].mxu0  ;;  %v546_v40 = vpop.f32.mrb[2].mxu1 }
 0x45c   :  { %v415_v42 = vmul.f32 0.35355338, %v410_v39  ;;  %v2025_v43 = vpop.f32.mrb[7].mxu0  ;;  %v2037_v44 = vpop.f32.mrb[3].mxu1  ;;  %v2988_v45 = vadd.f32 %v414_v35, %v2983_v34  ;;  %v551_v46 = vmul.f32 0.35355338, %v546_v40  ;;  %v2996_v50 = vadd.f32 %v550_v36, %v2983_v34 }
 0x45e   :  { %v419_v47 = vsel %vm418_vm11, %v2988_v45, -inf  ;;  %v2993_v49 = vadd.f32 %v415_v42, %v2985_v41  ;;  %v554_v55 = vsel %vm418_vm11, %v2996_v50, -inf  ;;  %v3003_v56 = vadd.f32 %v551_v46, %v2985_v41 }
 0x45f   :  { %420 = vmax.xlane.f32.xlu0 %v419_v47 }
 0x460   :  { %v423_v51 = vsel %vm422_vm12, %v2993_v49, -inf  ;;  %v557_v60 = vsel %vm422_vm12, %v3003_v56, -inf }
 0x461   :  { %424 = vmax.xlane.f32.xlu1 %v423_v51  ;;  %v682_v52 = vpop.f32.mrb[4].mxu1 }
 0x462   :  { %v689_v53 = vmul.f32 0.35355338, %v682_v52  ;;  %v2048_v54 = vpop.f32.mrb[5].mxu1 }
 0x463   :  { %555 = vmax.xlane.f32.xlu0 %v554_v55  ;;  %v685_v58 = vpop.f32.mrb[6].mxu1 }
 0x464   :  { %v2049_v59 = vpop.f32.mrb[7].mxu1  ;;  %v3008_v61 = vadd.f32 %v689_v53, %v2983_v34  ;;  %v690_v40 = vmul.f32 0.35355338, %v685_v58 }
 0x466   :  { %v693_v2 = vsel %vm418_vm11, %v3008_v61, -inf  ;;  %v3045_v44 = vadd.f32 %v690_v40, %v2985_v41 }
 0x467   :  { %558 = vmax.xlane.f32.xlu0 %v557_v60 }
 0x468   :  { %v696_v47 = vsel %vm422_vm12, %v3045_v44, -inf }
 0x469   :  { %v821_v62 = vpop.f32.mrb[8].mxu1 }
 0x46a   :  { %v828_v0 = vmul.f32 0.35355338, %v821_v62  ;;  %v2060_v1 = vpop.f32.mrb[9].mxu1 }
 0x46b   :  { %694 = vmax.xlane.f32.xlu0 %v693_v2  ;;  %v824_v3 = vpop.f32.mrb[10].mxu1 }
 0x46c   :  { %v2061_v4 = vpop.f32.mrb[11].mxu1  ;;  %v3013_v5 = vadd.f32 %v828_v0, %v2983_v34  ;;  %v829_v43 = vmul.f32 0.35355338, %v824_v3 }
 0x46e   :  { %v832_v6 = vsel %vm418_vm11, %v3013_v5, -inf  ;;  %v3052_v51 = vadd.f32 %v829_v43, %v2985_v41 }
 0x46f   :  { %833 = vmax.xlane.f32.xlu0 %v832_v6 }
 0x471   :  { %v967_v7 = vpop.f32.mrb[12].mxu1 }
 0x472   :  { %v974_v8 = vmul.f32 0.35355338, %v967_v7  ;;  %577 = vrot.lane.b32.xlu1 %v2920_v57, %s2644_s20  ;;  %v2072_v9 = vpop.f32.mrb[13].mxu1 }
 0x473   :  { %v970_v10 = vpop.f32.mrb[14].mxu1 }
 0x474   :  { %v2073_v11 = vpop.f32.mrb[15].mxu1  ;;  %v3020_v12 = vadd.f32 %v974_v8, %v2983_v34  ;;  %v975_v46 = vmul.f32 0.35355338, %v970_v10 }
 0x476   :  { %v978_v13 = vsel %vm418_vm11, %v3020_v12, -inf  ;;  %v3057_v52 = vadd.f32 %v975_v46, %v2985_v41 }
 0x477   :  { %979 = vmax.xlane.f32.xlu0 %v978_v13 }
 0x478   :  { %v981_v53 = vsel %vm422_vm12, %v3057_v52, -inf }
 0x479   :  { %v1096_v14 = vpop.f32.mrb[16].mxu1 }
 0x47a   :  { %v1103_v15 = vmul.f32 0.35355338, %v1096_v14  ;;  %v2084_v16 = vpop.f32.mrb[17].mxu1 }
 0x47b   :  { %v1099_v18 = vpop.f32.mrb[18].mxu1 }
 0x47c   :  { %v1104_v19 = vmul.f32 0.35355338, %v1099_v18  ;;  %v2085_v20 = vpop.f32.mrb[19].mxu1  ;;  %v3025_v21 = vadd.f32 %v1103_v15, %v2983_v34 }
 0x47e   :  { %v1107_v22 = vsel %vm418_vm11, %v3025_v21, -inf  ;;  %v3030_v23 = vadd.f32 %v1104_v19, %v2985_v41 }
 0x47f   :  { %1108 = vmax.xlane.f32.xlu0 %v1107_v22 }
 0x480   :  { %v1110_v54 = vsel %vm422_vm12, %v3030_v23, -inf }
 0x481   :  { %v1233_v24 = vpop.f32.mrb[20].mxu1 }
 0x482   :  { %v1240_v25 = vmul.f32 0.35355338, %v1233_v24  ;;  %v2096_v26 = vpop.f32.mrb[21].mxu1 }
 0x483   :  { %v1236_v27 = vpop.f32.mrb[22].mxu1 }
 0x484   :  { %v1241_v28 = vmul.f32 0.35355338, %v1236_v27  ;;  %v2097_v29 = vpop.f32.mrb[23].mxu1  ;;  %v3033_v30 = vadd.f32 %v1240_v25, %v2983_v34 }
 0x486   :  { %v3036_v31 = vadd.f32 %v1241_v28, %v2985_v41 }
 0x488   :  { %v1247_v55 = vsel %vm422_vm12, %v3036_v31, -inf }
 0x489   :  { %v1370_v32 = vpop.f32.mrb[24].mxu1 }
 0x48a   :  { %v1377_v33 = vmul.f32 0.35355338, %v1370_v32  ;;  %v2108_v35 = vpop.f32.mrb[25].mxu1 }
 0x48b   :  { %v1373_v36 = vpop.f32.mrb[26].mxu1 }
 0x48c   :  { %v1378_v37 = vmul.f32 0.35355338, %v1373_v36  ;;  %v2109_v38 = vpop.f32.mrb[27].mxu1  ;;  %v3039_v39 = vadd.f32 %v1377_v33, %v2983_v34  ;;  %v835_v34 = vsel %vm422_vm12, %v3052_v51, -inf }
 0x48e   :  { %v3042_v42 = vadd.f32 %v1378_v37, %v2985_v41  ;;  %v1244_v41 = vsel %vm418_vm11, %v3033_v30, -inf  ;;  %v1381_v59 = vsel %vm418_vm11, %v3039_v39, -inf }
 0x490   :  { %v1384_v58 = vsel %vm422_vm12, %v3042_v42, -inf }
 0x495   :  { %716 = vrot.lane.b32.xlu0 %v2920_v57, %s2645_s7 }
 0x496   :  { %697 = vmax.xlane.f32.xlu1 %v696_v47 }
 0x49a   :  { %836 = vmax.xlane.f32.xlu1 %v835_v34 }
 0x49e   :  { %982 = vmax.xlane.f32.xlu1 %v981_v53 }
 0x4a2   :  { %1111 = vmax.xlane.f32.xlu1 %v1110_v54 }
 0x4a6   :  { %1248 = vmax.xlane.f32.xlu1 %v1247_v55 }
 0x4aa   :  { %1385 = vmax.xlane.f32.xlu1 %v1384_v58 }
 0x4b4   :  { %1245 = vmax.xlane.f32.xlu0 %v1244_v41 }
 0x4b8   :  { %1382 = vmax.xlane.f32.xlu0 %v1381_v59 }
 0x4bb   :  { %855 = vrot.lane.b32.xlu1 %v2920_v57, %s2646_s4 }
 0x4ec   :  { %v421_v60 = vpop.xlane.xlu0 %420 }
 0x4ed   :  { %v426_v62 = vsub.f32 %v2988_v45, %v421_v60 }
 0x4ee   :  { %v425_v0 = vpop.xlane.xlu1 %424 }
 0x4ef   :  { %v428_v1 = vmul.f32 1.442695, %v426_v62  ;;  %v427_v2 = vsub.f32 %v2993_v49, %v425_v0 }
 0x4f0   :  { %v556_v3 = vpop.xlane.xlu0 %555 }
 0x4f1   :  { %2207 = vpow2.f32 %v428_v1  ;;  %v430_v4 = vmul.f32 1.442695, %v427_v2  ;;  %v560_v6 = vsub.f32 %v2996_v50, %v556_v3 }
 0x4f2   :  { %v3098_v20 = vpop.permute.xlu1 %577 }
 0x4f3   :  { %2209 = vpow2.f32 %v430_v4  ;;  %v562_v7 = vmul.f32 1.442695, %v560_v6 }
 0x4f4   :  { %v559_v8 = vpop.xlane.xlu0 %558 }
 0x4f5   :  { %2211 = vpow2.f32 %v562_v7  ;;  %v561_v9 = vsub.f32 %v3003_v56, %v559_v8 }
 0x4f7   :  { %v564_v10 = vmul.f32 1.442695, %v561_v9 }
 0x4f8   :  { %v695_v57 = vpop.xlane.xlu0 %694 }
 0x4f9   :  { %2213 = vpow2.f32 %v564_v10  ;;  %v699_v45 = vsub.f32 %v3008_v61, %v695_v57 }
 0x4fb   :  { %v3078_v11 = vpop.eup %2207  ;;  %v701_v13 = vmul.f32 1.442695, %v699_v45 }
 0x4fc   :  { %v432_v49 = vsel %vm418_vm11, %v3078_v11, 0.0  ;;  %v834_v22 = vpop.xlane.xlu0 %833 }
 0x4fd   :  { %v3082_v14 = vpop.eup %2209  ;;  %2215 = vpow2.f32 %v701_v13  ;;  %433 = vadd.xlane.f32.xlu0 %v432_v49  ;;  %v838_v24 = vsub.f32 %v3013_v5, %v834_v22 }
 0x4fe   :  { %v435_v50 = vsel %vm422_vm12, %v3082_v14, 0.0 }
 0x4ff   :  { %v3086_v15 = vpop.eup %2211  ;;  %436 = vadd.xlane.f32.xlu1 %v435_v50  ;;  %v840_v28 = vmul.f32 1.442695, %v838_v24 }
 0x500   :  { %v566_v56 = vsel %vm418_vm11, %v3086_v15, 0.0 }
 0x501   :  { %567 = vadd.xlane.f32.xlu0 %v566_v56 }
 0x503   :  { %v3090_v61 = vpop.eup %2213 }
 0x504   :  { %v569_v16 = vsel %vm422_vm12, %v3090_v61, 0.0  ;;  %v980_v27 = vpop.xlane.xlu0 %979 }
 0x505   :  { %570 = vadd.xlane.f32.xlu1 %v569_v16  ;;  %v984_v33 = vsub.f32 %v3020_v12, %v980_v27 }
 0x507   :  { %v3094_v18 = vpop.eup %2215  ;;  %v986_v40 = vmul.f32 1.442695, %v984_v33 }
 0x508   :  { %v705_v19 = vsel %vm418_vm11, %v3094_v18, 0.0 }
 0x509   :  { %706 = vadd.xlane.f32.xlu0 %v705_v19 }
 0x50c   :  { %v1109_v37 = vpop.xlane.xlu0 %1108 }
 0x50d   :  { %v1113_v5 = vsub.f32 %v3025_v21, %v1109_v37  ;;  %v583_v37 = vand.u32 %v3098_v20, %v2958_v17 }
 0x50f   :  { %v1115_v34 = vmul.f32 1.442695, %v1113_v5 }
 0x510   :  { %v3126_v62 = vpop.permute.xlu0 %716 }
 0x51f   :  { %1001 = vrot.lane.b32.xlu0 %v2928_v63, %s2618_s1  ;;  %s2647_s1 = smov 16  }
 0x523   :  { %v698_v25 = vpop.xlane.xlu1 %697 }
 0x524   :  { %v700_v26 = vsub.f32 %v3045_v44, %v698_v25 }
 0x526   :  { %v703_v29 = vmul.f32 1.442695, %v700_v26 }
 0x527   :  { %v837_v32 = vpop.xlane.xlu1 %836 }
 0x528   :  { %2217 = vpow2.f32 %v703_v29  ;;  %v839_v35 = vsub.f32 %v3052_v51, %v837_v32 }
 0x529   :  { %2219 = vpow2.f32 %v840_v28 }
 0x52a   :  { %v842_v36 = vmul.f32 1.442695, %v839_v35 }
 0x52b   :  { %v983_v38 = vpop.xlane.xlu1 %982 }
 0x52c   :  { %v985_v43 = vsub.f32 %v3057_v52, %v983_v38  ;;  %2221 = vpow2.f32 %v842_v36 }
 0x52d   :  { %2223 = vpow2.f32 %v986_v40 }
 0x52e   :  { %v988_v44 = vmul.f32 1.442695, %v985_v43 }
 0x52f   :  { %v1112_v46 = vpop.xlane.xlu1 %1111 }
 0x530   :  { %2225 = vpow2.f32 %v988_v44  ;;  %v1114_v12 = vsub.f32 %v3030_v23, %v1112_v46 }
 0x531   :  { %2227 = vpow2.f32 %v1115_v34 }
 0x532   :  { %v3108_v47 = vpop.eup %2217  ;;  %v1117_v52 = vmul.f32 1.442695, %v1114_v12 }
 0x533   :  { %v1249_v51 = vpop.xlane.xlu1 %1248  ;;  %v708_v53 = vsel %vm422_vm12, %v3108_v47, 0.0  ;;  %v3113_v54 = vpop.eup %2219 }
 0x534   :  { %709 = vadd.xlane.f32.xlu1 %v708_v53  ;;  %v1251_v21 = vsub.f32 %v3036_v31, %v1249_v51  ;;  %v844_v55 = vsel %vm418_vm11, %v3113_v54, 0.0  ;;  %2229 = vpow2.f32 %v1117_v52 }
 0x536   :  { %v3118_v58 = vpop.eup %2221  ;;  %v1254_v23 = vmul.f32 1.442695, %v1251_v21 }
 0x537   :  { %v3120_v41 = vpop.eup %2223  ;;  %v847_v59 = vsel %vm422_vm12, %v3118_v58, 0.0  ;;  %v1386_v2 = vpop.xlane.xlu1 %1385 }
 0x538   :  { %845 = vadd.xlane.f32.xlu1 %v844_v55  ;;  %v990_v31 = vsel %vm418_vm11, %v3120_v41, 0.0  ;;  %2231 = vpow2.f32 %v1254_v23  ;;  %v1388_v8 = vsub.f32 %v3042_v42, %v1386_v2 }
 0x53a   :  { %v3124_v60 = vpop.eup %2225  ;;  %v1391_v49 = vmul.f32 1.442695, %v1388_v8 }
 0x53b   :  { %v993_v0 = vsel %vm422_vm12, %v3124_v60, 0.0  ;;  %v3132_v1 = vpop.eup %2227  ;;  %v856_v24 = vpop.permute.xlu1 %855 }
 0x53c   :  { %848 = vadd.xlane.f32.xlu1 %v847_v59  ;;  %v1119_v6 = vsel %vm418_vm11, %v3132_v1, 0.0  ;;  %v861_v55 = vand.u32 %v856_v24, %v2958_v17 }
 0x53e   :  { %991 = vadd.xlane.f32.xlu0 %v990_v31  ;;  %v3137_v7 = vpop.eup %2229 }
 0x53f   :  { %v1122_v45 = vsel %vm422_vm12, %v3137_v7, 0.0 }
 0x540   :  { %994 = vadd.xlane.f32.xlu1 %v993_v0 }
 0x541   :  { %v1246_v3 = vpop.xlane.xlu0 %1245 }
 0x542   :  { %v1250_v4 = vsub.f32 %v3033_v30, %v1246_v3  ;;  %v3143_v13 = vpop.eup %2231 }
 0x543   :  { %v1259_v50 = vsel %vm422_vm12, %v3143_v13, 0.0 }
 0x544   :  { %v1252_v9 = vmul.f32 1.442695, %v1250_v4  ;;  %1120 = vadd.xlane.f32.xlu1 %v1119_v6 }
 0x545   :  { %v1383_v10 = vpop.xlane.xlu0 %1382 }
 0x546   :  { %2233 = vpow2.f32 %v1252_v9  ;;  %v1387_v57 = vsub.f32 %v3039_v39, %v1383_v10 }
 0x548   :  { %v1389_v30 = vmul.f32 1.442695, %v1387_v57  ;;  %1123 = vadd.xlane.f32.xlu1 %v1122_v45 }
 0x54a   :  { %2235 = vpow2.f32 %v1389_v30 }
 0x54b   :  { %2237 = vpow2.f32 %v1391_v49 }
 0x54c   :  { %1260 = vadd.xlane.f32.xlu1 %v1259_v50 }
 0x550   :  { %v3147_v42 = vpop.eup %2233 }
 0x551   :  { %v1256_v56 = vsel %vm418_vm11, %v3147_v42, 0.0 }
 0x552   :  { %1257 = vadd.xlane.f32.xlu0 %v1256_v56 }
 0x554   :  { %v3151_v39 = vpop.eup %2235 }
 0x555   :  { %v1393_v16 = vsel %vm418_vm11, %v3151_v39, 0.0  ;;  %v3155_v19 = vpop.eup %2237 }
 0x556   :  { %1394 = vadd.xlane.f32.xlu1 %v1393_v16  ;;  %v1396_v22 = vsel %vm422_vm12, %v3155_v19, 0.0 }
 0x55a   :  { %1397 = vadd.xlane.f32.xlu1 %v1396_v22 }
 0x568   :  { %1130 = vrot.lane.b32.xlu0 %v2928_v63, %s2644_s20 }
 0x56b   :  { %1267 = vrot.lane.b32.xlu1 %v2928_v63, %s2645_s7 }
 0x56c   :  { %1404 = vrot.lane.b32.xlu0 %v2928_v63, %s2646_s4 }
 0x58a   :  { %v434_v25 = vpop.xlane.xlu0 %433 }
 0x58b   :  { %2239 = vrcp.f32 %v434_v25 }
 0x58c   :  { %v437_v26 = vpop.xlane.xlu1 %436 }
 0x58d   :  { %2241 = vrcp.f32 %v437_v26 }
 0x58e   :  { %v568_v27 = vpop.xlane.xlu0 %567 }
 0x58f   :  { %2243 = vrcp.f32 %v568_v27 }
 0x592   :  { %v571_v28 = vpop.xlane.xlu1 %570 }
 0x593   :  { %2245 = vrcp.f32 %v571_v28 }
 0x595   :  { %v2240_v29 = vpop.eup %2239 }
 0x596   :  { %v440_v33 = vmul.f32 %v2240_v29, %v3078_v11  ;;  %v707_v20 = vpop.xlane.xlu0 %706 }
 0x597   :  { %v2242_v32 = vpop.eup %2241  ;;  %2247 = vrcp.f32 %v707_v20 }
 0x598   :  { %v441_v35 = vmul.f32 %v2242_v32, %v3082_v14  ;;  %v722_v14 = vand.u32 %v3126_v62, %v2958_v17 }
 0x599   :  { %v2244_v63 = vpop.eup %2243 }
 0x59a   :  { %v442_v36 = vpack.c.bf16 %v441_v35, %v440_v33  ;;  %v574_v11 = vmul.f32 %v2244_v63, %v3086_v15  ;;  %v1002_v44 = vpop.permute.xlu0 %1001 }
 0x59b   :  { %v1007_v3 = vand.u32 %v1002_v44, %v2958_v17 }
 0x59c   :  { %2029 = vmatmul.mubr.msk.bf16.vlgmr.msra.gmra.mrb[8].mxu0 %vm418_vm11, %v442_v36 }
 0x59d   :  { %v2246_v38 = vpop.eup %2245  ;;  %2039 = vmatpush3.bf16.msra.mxu0 %v583_v37  ;;  %2040 = vmatprep.mubr.msk.bf16.mxu0 %vm2634_vm2, %v2633_v48 }
 0x59e   :  { %v575_v40 = vmul.f32 %v2246_v38, %v3090_v61  ;;  %2050 = vmatprep.subr.bf16.mxu0 %v2633_v48 }
 0x5a0   :  { %v576_v43 = vpack.c.bf16 %v575_v40, %v574_v11 }
 0x5a1   :  { %v2248_v46 = vpop.eup %2247 }
 0x5a2   :  { %v713_v12 = vmul.f32 %v2248_v46, %v3094_v18 }
 0x5a4   :  { %2041 = vmatmul.mubr.msk.bf16.vlgmr.msra.gmra.mrb[12].mxu0 %vm418_vm11, %v576_v43 }
 0x5a5   :  { %2051 = vmatpush3.bf16.msra.mxu0 %v722_v14  ;;  %2052 = vmatprep.mubr.msk.bf16.mxu0 %vm2634_vm2, %v2633_v48 }
 0x5a6   :  { %2062 = vmatprep.subr.bf16.mxu0 %v2633_v48 }
 0x5c1   :  { %v710_v5 = vpop.xlane.xlu1 %709 }
 0x5c2   :  { %2249 = vrcp.f32 %v710_v5 }
 0x5c5   :  { %v846_v61 = vpop.xlane.xlu1 %845 }
 0x5c6   :  { %2251 = vrcp.f32 %v846_v61 }
 0x5c9   :  { %v849_v15 = vpop.xlane.xlu1 %848 }
 0x5ca   :  { %2253 = vrcp.f32 %v849_v15 }
 0x5cb   :  { %v992_v53 = vpop.xlane.xlu0 %991 }
 0x5cc   :  { %v2250_v34 = vpop.eup %2249 }
 0x5cd   :  { %v714_v51 = vmul.f32 %v2250_v34, %v3108_v47  ;;  %v995_v52 = vpop.xlane.xlu1 %994 }
 0x5ce   :  { %2255 = vrcp.f32 %v995_v52 }
 0x5cf   :  { %v715_v21 = vpack.c.bf16 %v714_v51, %v713_v12  ;;  %2257 = vrcp.f32 %v992_v53 }
 0x5d0   :  { %v2252_v59 = vpop.eup %2251 }
 0x5d1   :  { %v1121_v23 = vpop.xlane.xlu1 %1120  ;;  %2053 = vmatmul.mubr.msk.bf16.vlgmr.msra.gmra.mrb[16].mxu0 %vm418_vm11, %v715_v21  ;;  %v852_v47 = vmul.f32 %v2252_v59, %v3113_v54  ;;  %v2189_v21 = vld [vmem:[#allocation12] sm:$0xff]  }
 0x5d2   :  { %2063 = vmatpush3.bf16.msra.mxu0 %v861_v55  ;;  %2064 = vmatprep.mubr.msk.bf16.mxu0 %vm2634_vm2, %v2633_v48  ;;  %v2190_v55 = vld [vmem:[#allocation12 + $0x8] sm:$0xff]  }
 0x5d3   :  { %2074 = vmatprep.subr.bf16.mxu0 %v2633_v48  ;;  %2116 = vmatprep.subr.bf16.mxu1 %v2189_v21 }
 0x5d4   :  { %v2254_v18 = vpop.eup %2253  ;;  %2117 = vmatpush3.bf16.msra.mxu1 %v2189_v21 }
 0x5d5   :  { %v853_v62 = vmul.f32 %v2254_v18, %v3118_v58  ;;  %v1124_v31 = vpop.xlane.xlu1 %1123  ;;  %2118 = vmatprep.subr.bf16.mxu1 %v2190_v55 }
 0x5d6   :  { %2259 = vrcp.f32 %v1124_v31 }
 0x5d7   :  { %v854_v0 = vpack.c.bf16 %v853_v62, %v852_v47  ;;  %2261 = vrcp.f32 %v1121_v23 }
 0x5d8   :  { %v2256_v2 = vpop.eup %2255  ;;  %2119 = vmatpush3.bf16.msra.mxu1 %v2190_v55 }
 0x5d9   :  { %2065 = vmatmul.mubr.msk.bf16.vlgmr.msra.gmra.mrb[20].mxu0 %vm418_vm11, %v854_v0  ;;  %v2258_v4 = vpop.eup %2257  ;;  %v999_v6 = vmul.f32 %v2256_v2, %v3124_v60  ;;  %v1261_v54 = vpop.xlane.xlu1 %1260 }
 0x5da   :  { %2075 = vmatpush3.bf16.msra.mxu0 %v1007_v3  ;;  %2076 = vmatprep.mubr.msk.bf16.mxu0 %vm2634_vm2, %v2633_v48  ;;  %v998_v58 = vmul.f32 %v2258_v4, %v3120_v41  ;;  %2263 = vrcp.f32 %v1261_v54 }
 0x5db   :  { %2086 = vmatprep.subr.bf16.mxu0 %v2633_v48 }
 0x5dc   :  { %v1000_v9 = vpack.c.bf16 %v999_v6, %v998_v58 }
 0x5df   :  { %v1258_v8 = vpop.xlane.xlu0 %1257 }
 0x5e0   :  { %v2260_v10 = vpop.eup %2259  ;;  %2265 = vrcp.f32 %v1258_v8 }
 0x5e1   :  { %2077 = vmatmul.mubr.msk.bf16.vlgmr.msra.gmra.mrb[24].mxu0 %vm418_vm11, %v1000_v9  ;;  %v2262_v57 = vpop.eup %2261  ;;  %v1128_v45 = vmul.f32 %v2260_v10, %v3137_v7 }
 0x5e2   :  { %2088 = vmatprep.mubr.msk.bf16.mxu0 %vm2634_vm2, %v2633_v48  ;;  %v1127_v50 = vmul.f32 %v2262_v57, %v3132_v1 }
 0x5e3   :  { %v1395_v49 = vpop.xlane.xlu1 %1394  ;;  %v1131_v60 = vpop.permute.xlu0 %1130 }
 0x5e4   :  { %v1136_v30 = vand.u32 %v1131_v60, %v2958_v17  ;;  %2267 = vrcp.f32 %v1395_v49  ;;  %v1129_v56 = vpack.c.bf16 %v1128_v45, %v1127_v50  ;;  %v2264_v16 = vpop.eup %2263 }
 0x5e5   :  { %v1265_v1 = vmul.f32 %v2264_v16, %v3143_v13 }
 0x5e6   :  { %2087 = vmatpush3.bf16.msra.mxu0 %v1136_v30 }
 0x5e7   :  { %v1398_v41 = vpop.xlane.xlu1 %1397  ;;  %2098 = vmatprep.subr.bf16.mxu0 %v2633_v48  ;;  %v1405_v26 = vpop.permute.xlu0 %1404 }
 0x5e8   :  { %2269 = vrcp.f32 %v1398_v41  ;;  %v1410_v28 = vand.u32 %v1405_v26, %v2958_v17 }
 0x5e9   :  { %2089 = vmatmul.mubr.msk.bf16.vlgmr.msra.gmra.mrb[28].mxu0 %vm418_vm11, %v1129_v56 }
 0x5ea   :  { %v2266_v22 = vpop.eup %2265  ;;  %2100 = vmatprep.mubr.msk.bf16.mxu0 %vm2634_vm2, %v2633_v48 }
 0x5eb   :  { %v1264_v7 = vmul.f32 %v2266_v22, %v3147_v42  ;;  %v1268_v24 = vpop.permute.xlu1 %1267  ;;  %v1937_v22 = vld [vmem:[#allocation14] ss:$0 sm:$0xff] }
 0x5ec   :  { %v1273_v25 = vand.u32 %v1268_v24, %v2958_v17 }
 0x5ed   :  { %v1266_v27 = vpack.c.bf16 %v1265_v1, %v1264_v7 }
 0x5ee   :  { %2099 = vmatpush3.bf16.msra.mxu0 %v1273_v25  ;;  %v2268_v29 = vpop.eup %2267 }
 0x5ef   :  { %2110 = vmatprep.subr.bf16.mxu0 %v2633_v48  ;;  %v1401_v33 = vmul.f32 %v2268_v29, %v3151_v39 }
 0x5f1   :  { %2101 = vmatmul.mubr.msk.bf16.vlgmr.msra.gmra.mrb[32].mxu0 %vm418_vm11, %v1266_v27 }
 0x5f2   :  { %v2270_v32 = vpop.eup %2269  ;;  %2111 = vmatpush3.bf16.msra.mxu0 %v1410_v28  ;;  %2112 = vmatprep.mubr.msk.bf16.mxu0 %vm2634_vm2, %v2633_v48  ;;  %vm773_vm2 = vcmask 195712   ;;  %v2289_v28 = vld [vmem:[#allocation3] sm:$0xff] }
 0x5f3   :  { %v1402_v42 = vmul.f32 %v2270_v32, %v3155_v19 }
 0x5f5   :  { %v1403_v13 = vpack.c.bf16 %v1402_v42, %v1401_v33  ;;  %v2290_v42 = vld [vmem:[#allocation3 + $0x10] sm:$0x3f] }
 0x5f9   :  { %2113 = vmatmul.mubr.msk.bf16.vlgmr.msra.gmra.mrb[36].mxu0 %vm418_vm11, %v1403_v13  ;;  %v2291_v13 = vld [vmem:[#allocation3 + $0x8] sm:$0xff] }
 0x66f   :  { %v489_v35 = vpop.f32.mrb[8].mxu0 }
 0x670   :  { %496 = vst.msk [vmem:[#allocation2] sm:$0xff] %vm366_vm3, %v489_v35  ;;  %v2030_v17 = vpop.f32.mrb[9].mxu0 }
 0x671   :  { %v492_v36 = vpop.f32.mrb[10].mxu0 }
 0x672   :  { %498 = vst.msk [vmem:[#allocation2 + $0x8] sm:$0x7] %vm497_vm13, %v492_v36  ;;  %v2031_v37 = vpop.f32.mrb[11].mxu0 }
 0x677   :  { %v619_v63 = vpop.f32.mrb[12].mxu0 }
 0x678   :  { %628 = vrot.lane.b32.xlu0 %v619_v63, %s2626_s26  ;;  %v2042_v48 = vpop.f32.mrb[13].mxu0 }
 0x679   :  { %v622_v38 = vpop.f32.mrb[14].mxu0 }
 0x67a   :  { %v2043_v19 = vpop.f32.mrb[15].mxu0 }
 0x67c   :  { %630 = vrot.lane.b32.xlu0 %v622_v38, %s2626_s26 }
 0x6a4   :  { %v758_v39 = vpop.f32.mrb[16].mxu0 }
 0x6a5   :  { %767 = vrot.lane.b32.xlu1 %v758_v39, %s2647_s1  ;;  %v2054_v40 = vpop.f32.mrb[17].mxu0 }
 0x6a6   :  { %v761_v11 = vpop.f32.mrb[18].mxu0 }
 0x6a7   :  { %769 = vrot.lane.b32.xlu0 %v761_v11, %s2647_s1  ;;  %v2055_v43 = vpop.f32.mrb[19].mxu0 }
 0x6ac   :  { %v897_v14 = vpop.f32.mrb[20].mxu0 }
 0x6ad   :  { %906 = vrot.lane.b32.xlu1 %v897_v14, %s2648_s27  ;;  %v2066_v20 = vpop.f32.mrb[21].mxu0 }
 0x6ae   :  { %v900_v5 = vpop.f32.mrb[22].mxu0 }
 0x6af   :  { %908 = vrot.lane.b32.xlu0 %v900_v5, %s2648_s27  ;;  %v2067_v61 = vpop.f32.mrb[23].mxu0 }
 0x6b4   :  { %v1043_v44 = vpop.f32.mrb[24].mxu0 }
 0x6b5   :  { %1050 = vst.msk [vmem:[#allocation2 + $0xb] sm:$0xff] %vm366_vm3, %v1043_v44  ;;  %v2078_v15 = vpop.f32.mrb[25].mxu0  ;;  %vm775_vm3 = vcmask 190592  }
 0x6b6   :  { %v1046_v46 = vpop.f32.mrb[26].mxu0 }
 0x6b7   :  { %1051 = vst.msk [vmem:[#allocation2 + $0x13] sm:$0x7] %vm497_vm13, %v1046_v46  ;;  %v2079_v34 = vpop.f32.mrb[27].mxu0 }
 0x6b8   :  { %v2191_v34 = vld [vmem:[#allocation18] sm:$0xff]  }
 0x6b9   :  { %2124 = vmatprep.subr.bf16.mxu0 %v2191_v34 }
 0x6ba   :  { %2125 = vmatpush3.bf16.msra.mxu0 %v2191_v34 }
 0x6bc   :  { %v1172_v12 = vpop.f32.mrb[28].mxu0 }
 0x6bd   :  { %1181 = vrot.lane.b32.xlu0 %v1172_v12, %s2626_s26  ;;  %v2090_v51 = vpop.f32.mrb[29].mxu0  ;;  %v2192_v12 = vld [vmem:[#allocation18 + $0x8] sm:$0xff]  }
 0x6be   :  { %v1175_v53 = vpop.f32.mrb[30].mxu0  ;;  %2126 = vmatprep.subr.bf16.mxu0 %v2192_v12 }
 0x6bf   :  { %1183 = vrot.lane.b32.xlu1 %v1175_v53, %s2626_s26  ;;  %v2091_v52 = vpop.f32.mrb[31].mxu0  ;;  %2127 = vmatpush3.bf16.msra.mxu0 %v2192_v12 }
 0x6c4   :  { %v1309_v23 = vpop.f32.mrb[32].mxu0 }
 0x6c5   :  { %1318 = vrot.lane.b32.xlu0 %v1309_v23, %s2647_s1  ;;  %v2102_v59 = vpop.f32.mrb[33].mxu0 }
 0x6c6   :  { %v1312_v18 = vpop.f32.mrb[34].mxu0 }
 0x6c7   :  { %1320 = vrot.lane.b32.xlu1 %v1312_v18, %s2647_s1  ;;  %v2103_v47 = vpop.f32.mrb[35].mxu0 }
 0x6cc   :  { %v1446_v62 = vpop.f32.mrb[36].mxu0 }
 0x6cd   :  { %1455 = vrot.lane.b32.xlu0 %v1446_v62, %s2648_s27  ;;  %v2114_v31 = vpop.f32.mrb[37].mxu0 }
 0x6ce   :  { %v1449_v0 = vpop.f32.mrb[38].mxu0 }
 0x6cf   :  { %1457 = vrot.lane.b32.xlu1 %v1449_v0, %s2648_s27  ;;  %v2115_v2 = vpop.f32.mrb[39].mxu0  ;;  %v1942_v0 = vld [vmem:[#allocation15] ss:$0 sm:$0xff] }
 0x6ea   :  { %v629_v3 = vpop.permute.xlu0 %628 }
 0x6eb   :  { %635 = vst.msk [vmem:[#allocation2] sm:$0xff] %vm634_vm14, %v629_v3 }
 0x6ee   :  { %v631_v4 = vpop.permute.xlu0 %630 }
 0x6ef   :  { %637 = vst.msk [vmem:[#allocation2 + $0x8] sm:$0x7] %vm636_vm15, %v631_v4 }
 0x717   :  { %v768_v6 = vpop.permute.xlu1 %767 }
 0x718   :  { %774 = vst.msk [vmem:[#allocation2] sm:$0xff] %vm773_vm2, %v768_v6 }
 0x719   :  { %v770_v54 = vpop.permute.xlu0 %769 }
 0x71a   :  { %776 = vst.msk [vmem:[#allocation2 + $0x8] sm:$0x7] %vm775_vm3, %v770_v54 }
 0x71f   :  { %v907_v58 = vpop.permute.xlu1 %906 }
 0x720   :  { %913 = vst.msk [vmem:[#allocation2] sm:$0xff] %vm912_vm4, %v907_v58 }
 0x721   :  { %v909_v8 = vpop.permute.xlu0 %908 }
 0x722   :  { %915 = vst.msk [vmem:[#allocation2 + $0x8] sm:$0x7] %vm914_vm5, %v909_v8  ;;  %v1943_v8 = vld [vmem:[#allocation17] ss:$0 sm:$0xff] }
 0x727   :  { %v1463_v30 = vld [vmem:[#allocation2] sm:$0xff] }
 0x72f   :  { %v1182_v9 = vpop.permute.xlu0 %1181 }
 0x730   :  { %1187 = vst.msk [vmem:[#allocation2 + $0xb] sm:$0xff] %vm634_vm14, %v1182_v9 }
 0x731   :  { %v1184_v10 = vpop.permute.xlu1 %1183 }
 0x732   :  { %1188 = vst.msk [vmem:[#allocation2 + $0x13] sm:$0x7] %vm636_vm15, %v1184_v10 }
 0x737   :  { %v1319_v57 = vpop.permute.xlu0 %1318 }
 0x738   :  { %1324 = vst.msk [vmem:[#allocation2 + $0xb] sm:$0xff] %vm773_vm2, %v1319_v57 }
 0x739   :  { %v1321_v45 = vpop.permute.xlu1 %1320 }
 0x73a   :  { %1325 = vst.msk [vmem:[#allocation2 + $0x13] sm:$0x7] %vm775_vm3, %v1321_v45 }
 0x73f   :  { %v1456_v49 = vpop.permute.xlu0 %1455 }
 0x740   :  { %1461 = vst.msk [vmem:[#allocation2 + $0xb] sm:$0xff] %vm912_vm4, %v1456_v49 }
 0x741   :  { %v1458_v60 = vpop.permute.xlu1 %1457 }
 0x742   :  { %1462 = vst.msk [vmem:[#allocation2 + $0x13] sm:$0x7] %vm914_vm5, %v1458_v60 }
 0x747   :  { %v1464_v50 = vld [vmem:[#allocation2 + $0x8] sm:$0xff] }
 0x748   :  { %v1466_v41 = vpack.c.bf16 %v1464_v50, %v1463_v30  ;;  %v2193_v30 = vld [vmem:[#allocation21] sm:$0xff]   ;;  %v2194_v50 = vld [vmem:[#allocation21 + $0x8] sm:$0xff]  }
 0x749   :  { %v1465_v56 = vld [vmem:[#allocation2 + $0x10] sm:$0x3f]  ;;  %2132 = vmatprep.subr.bf16.mxu1 %v2193_v30 }
 0x74a   :  { %2120 = vmatprep.mubr.msk.bf16.mxu1 %vm211_vm0, %v1466_v41  ;;  %v1467_v16 = vpack.c.bf16 %v1465_v56, %v1465_v56  ;;  %v2195_v41 = vld [vmem:[#allocation21 + $0x10] sm:$0xff]   ;;  %v2196_v56 = vld [vmem:[#allocation21 + $0x18] sm:$0xff]  }
 0x74c   :  { %2121 = vmatmul.mubr.msk.bf16.vlgmr.msra.gmra.mrb[28].mxu1 %vm211_vm0, %v1467_v16  ;;  %v2197_v16 = vld [vmem:[#allocation21 + $0x20] sm:$0xff]  }
 0x74d   :  { %2133 = vmatpush3.bf16.msra.mxu1 %v2193_v30 }
 0x74e   :  { %2134 = vmatprep.subr.bf16.mxu1 %v2194_v50 }
 0x751   :  { %2135 = vmatpush3.bf16.msra.mxu1 %v2194_v50 }
 0x752   :  { %2136 = vmatprep.subr.bf16.mxu1 %v2195_v41 }
 0x755   :  { %2137 = vmatpush3.bf16.msra.mxu1 %v2195_v41 }
 0x756   :  { %2138 = vmatprep.subr.bf16.mxu1 %v2196_v56 }
 0x759   :  { %2139 = vmatpush3.bf16.msra.mxu1 %v2196_v56 }
 0x75a   :  { %2140 = vmatprep.subr.bf16.mxu1 %v2197_v16 }
 0x75d   :  { %2141 = vmatpush3.bf16.msra.mxu1 %v2197_v16 }
 0x81f   :  { %v2122_v7 = vpop.f32.mrb[28].mxu1 }
 0x820   :  { %v1531_v24 = vpop.f32.mrb[29].mxu1  ;;  %v1540_v25 = vadd.f32 %v2122_v7, %v1937_v22  ;;  %v2199_v7 = vld [vmem:[#allocation21 + $0x30] sm:$0xff]  }
 0x821   :  { %v1532_v1 = vadd.f32 %v1937_v22, %v1531_v24  ;;  %v2123_v26 = vpop.f32.mrb[30].mxu1  ;;  %v2200_v24 = vld [vmem:[#allocation21 + $0x38] sm:$0xff]  }
 0x822   :  { %v1534_v27 = vpop.f32.mrb[31].mxu1  ;;  %v3246_v33 = vadd.f32 %v2290_v42, %v1540_v25  ;;  %v1944_v25 = vld [vmem:[#allocation20] ss:$0 sm:$0xff] }
 0x823   :  { %v3244_v29 = vadd.f32 %v2289_v28, %v1532_v1  ;;  %v1535_v32 = vadd.f32 %v1937_v22, %v1534_v27  ;;  %v2198_v22 = vld [vmem:[#allocation21 + $0x28] sm:$0xff]  }
 0x824   :  { %v1556_v37 = vsel %vm218_vm1, %v3246_v33, 0.0  ;;  %2142 = vmatprep.subr.bf16.mxu1 %v2198_v22 }
 0x825   :  { %v3248_v35 = vadd.f32 %v2291_v13, %v1535_v32  ;;  %v1550_v17 = vsel %vm211_vm0, %v3244_v29, 0.0  ;;  %2143 = vmatpush3.bf16.msra.mxu1 %v2198_v22 }
 0x826   :  { %1551 = vadd.xlane.f32.xlu0 %v1550_v17  ;;  %2144 = vmatprep.subr.bf16.mxu1 %v2199_v7 }
 0x827   :  { %v1553_v36 = vsel %vm211_vm0, %v3248_v35, 0.0 }
 0x828   :  { %1554 = vadd.xlane.f32.xlu1 %v1553_v36 }
 0x829   :  { %2145 = vmatpush3.bf16.msra.mxu1 %v2199_v7 }
 0x82a   :  { %1557 = vadd.xlane.f32.xlu0 %v1556_v37  ;;  %2146 = vmatprep.subr.bf16.mxu1 %v2200_v24 }
 0x82d   :  { %2147 = vmatpush3.bf16.msra.mxu1 %v2200_v24 }
 0x8b3   :  { %v1552_v63 = vpop.xlane.xlu0 %1551 }
 0x8b4   :  { %v1559_v48 = vmul.f32 0.03125, %v1552_v63 }
 0x8b5   :  { %v1555_v38 = vpop.xlane.xlu1 %1554 }
 0x8b6   :  { %v1562_v19 = vsub.f32 %v3244_v29, %v1559_v48  ;;  %v1560_v39 = vmul.f32 0.03125, %v1555_v38 }
 0x8b7   :  { %v1558_v40 = vpop.xlane.xlu0 %1557 }
 0x8b8   :  { %v1563_v11 = vsub.f32 %v3248_v35, %v1560_v39  ;;  %v1561_v43 = vmul.f32 0.03125, %v1558_v40  ;;  %v1565_v14 = vmul.f32 %v1562_v19, %v1562_v19 }
 0x8ba   :  { %v1564_v20 = vsub.f32 %v3246_v33, %v1561_v43  ;;  %v1568_v5 = vsel %vm211_vm0, %v1565_v14, 0.0  ;;  %v1566_v61 = vmul.f32 %v1563_v11, %v1563_v11 }
 0x8bb   :  { %1569 = vadd.xlane.f32.xlu0 %v1568_v5 }
 0x8bc   :  { %v1567_v44 = vmul.f32 %v1564_v20, %v1564_v20  ;;  %v1571_v15 = vsel %vm211_vm0, %v1566_v61, 0.0 }
 0x8be   :  { %v1574_v46 = vsel %vm218_vm1, %v1567_v44, 0.0 }
 0x8bf   :  { %1572 = vadd.xlane.f32.xlu0 %v1571_v15  ;;  %1575 = vadd.xlane.f32.xlu1 %v1574_v46 }
 0x948   :  { %v1570_v51 = vpop.xlane.xlu0 %1569 }
 0x949   :  { %v1577_v53 = vmul.f32 0.03125, %v1570_v51 }
 0x94b   :  { %v1580_v52 = vadd.f32 1e-05, %v1577_v53 }
 0x94c   :  { %v1576_v21 = vpop.xlane.xlu1 %1575  ;;  %v1573_v55 = vpop.xlane.xlu0 %1572 }
 0x94d   :  { %2271 = vrsqrt.f32 %v1580_v52  ;;  %v1579_v23 = vmul.f32 0.03125, %v1576_v21  ;;  %v1578_v59 = vmul.f32 0.03125, %v1573_v55 }
 0x94f   :  { %v1582_v18 = vadd.f32 1e-05, %v1579_v23  ;;  %v1581_v47 = vadd.f32 1e-05, %v1578_v59 }
 0x951   :  { %2273 = vrsqrt.f32 %v1582_v18 }
 0x952   :  { %2275 = vrsqrt.f32 %v1581_v47 }
 0x957   :  { %v2272_v62 = vpop.eup %2271 }
 0x958   :  { %v1586_v31 = vmul.f32 %v2272_v62, %v1562_v19 }
 0x95a   :  { %v1595_v54 = vmul.f32 %v1942_v0, %v1586_v31 }
 0x95b   :  { %v2274_v2 = vpop.eup %2273 }
 0x95c   :  { %v2276_v3 = vpop.eup %2275  ;;  %v1588_v4 = vmul.f32 %v2274_v2, %v1564_v20  ;;  %v1604_v57 = vadd.f32 %v1943_v8, %v1595_v54 }
 0x95d   :  { %v1587_v6 = vmul.f32 %v2276_v3, %v1563_v11 }
 0x95e   :  { %v1597_v58 = vmul.f32 %v1942_v0, %v1588_v4 }
 0x95f   :  { %v1596_v9 = vmul.f32 %v1942_v0, %v1587_v6 }
 0x960   :  { %v1606_v10 = vadd.f32 %v1943_v8, %v1597_v58 }
 0x961   :  { %v1605_v45 = vadd.f32 %v1943_v8, %v1596_v9 }
 0x962   :  { %v1608_v49 = vpack.c.bf16 %v1606_v10, %v1606_v10 }
 0x963   :  { %v1607_v60 = vpack.c.bf16 %v1605_v45, %v1604_v57 }
 0x965   :  { %2128 = vmatprep.mubr.msk.bf16.mxu0 %vm211_vm0, %v1607_v60 }
 0x966   :  { %2129 = vmatmul.mubr.msk.bf16.vlgmr.msra.gmra.mrb[40].mxu0 %vm211_vm0, %v1608_v49 }
 0xa39   :  { %v2130_v1 = vpop.f32.mrb[40].mxu0 }
 0xa3a   :  { %v3264_v26 = vadd.f32 %v2130_v1, %v1944_v25  ;;  %v1672_v27 = vpop.f32.mrb[41].mxu0 }
 0xa3b   :  { %v3266_v28 = vadd.f32 %v1944_v25, %v1672_v27  ;;  %v2131_v32 = vpop.f32.mrb[42].mxu0 }
 0xa3c   :  { %v3269_v42 = vmul.f32 0.70710677, %v3264_v26  ;;  %v1675_v13 = vpop.f32.mrb[43].mxu0 }
 0xa3d   :  { %v3272_v17 = vmul.f32 0.70710677, %v3266_v28  ;;  %v3274_v36 = vadd.f32 %v1944_v25, %v1675_v13  ;;  %v2649_v13 = vmov -1.0  }
 0xa3e   :  { %v1700_v37 = vand.u32 2147483647, %v3269_v42  ;;  %vm1694_vm6 = vcmp.ge.f32.partialorder %v3269_v42, 0.0 }
 0xa3f   :  { %v1698_v63 = vand.u32 2147483647, %v3272_v17  ;;  %v3279_v38 = vmul.f32 0.70710677, %v3274_v36  ;;  %vm1692_vm7 = vcmp.ge.f32.partialorder %v3272_v17, 0.0  ;;  %v1688_v17 = vmul.f32 0.5, %v3264_v26 }
 0xa40   :  { %v1703_v48 = vmul.f32 0.3275911, %v1700_v37  ;;  %v1739_v20 = vsub.f32 0.0, %v1700_v37 }
 0xa41   :  { %v1701_v19 = vmul.f32 0.3275911, %v1698_v63  ;;  %v1699_v40 = vand.u32 2147483647, %v3279_v38  ;;  %v1737_v5 = vsub.f32 0.0, %v1698_v63  ;;  %vm1693_vm8 = vcmp.ge.f32.partialorder %v3279_v38, 0.0 }
 0xa42   :  { %v1706_v39 = vadd.f32 1.0, %v1703_v48  ;;  %v1742_v44 = vmul.f32 %v1739_v20, %v1700_v37  ;;  %v1697_v37 = vsel %vm1694_vm6, 1.0, %v2649_v13  ;;  %v1696_v42 = vsel %vm1693_vm8, 1.0, %v2649_v13  ;;  %v1949_v38 = vld [vmem:[#allocation23] ss:$0 sm:$0xff] }
 0xa43   :  { %v1704_v11 = vadd.f32 1.0, %v1701_v19  ;;  %v1702_v43 = vmul.f32 0.3275911, %v1699_v40  ;;  %v1738_v15 = vsub.f32 0.0, %v1699_v40  ;;  %v1740_v12 = vmul.f32 %v1737_v5, %v1698_v63 }
 0xa44   :  { %2277 = vrcp.f32 %v1706_v39  ;;  %v1747_v21 = vmul.f32 1.442695, %v1742_v44  ;;  %v1695_v19 = vsel %vm1692_vm7, 1.0, %v2649_v13  ;;  %v1686_v5 = vmul.f32 0.5, %v3266_v28 }
 0xa45   :  { %2279 = vrcp.f32 %v1704_v11  ;;  %v1705_v14 = vadd.f32 1.0, %v1702_v43  ;;  %v1741_v23 = vmul.f32 %v1738_v15, %v1699_v40  ;;  %v1743_v18 = vmul.f32 1.442695, %v1740_v12 }
 0xa47   :  { %2281 = vrcp.f32 %v1705_v14  ;;  %v1745_v3 = vmul.f32 1.442695, %v1741_v23 }
 0xa48   :  { %2283 = vpow2.f32 %v1747_v21 }
 0xa49   :  { %2285 = vpow2.f32 %v1743_v18 }
 0xa4a   :  { %2287 = vpow2.f32 %v1745_v3 }
 0xa4e   :  { %v2278_v61 = vpop.eup %2277 }
 0xa4f   :  { %v2280_v46 = vpop.eup %2279  ;;  %v1712_v34 = vmul.f32 1.0614054, %v2278_v61 }
 0xa50   :  { %v1710_v51 = vmul.f32 1.0614054, %v2280_v46 }
 0xa51   :  { %v1715_v53 = vadd.f32 -1.4531521, %v1712_v34  ;;  %v2282_v52 = vpop.eup %2281 }
 0xa52   :  { %v1713_v55 = vadd.f32 -1.4531521, %v1710_v51  ;;  %v1711_v47 = vmul.f32 1.0614054, %v2282_v52  ;;  %v2284_v56 = vpop.eup %2283 }
 0xa53   :  { %v1718_v59 = vmul.f32 %v2278_v61, %v1715_v53  ;;  %v2286_v22 = vpop.eup %2285 }
 0xa54   :  { %v1716_v62 = vmul.f32 %v2280_v46, %v1713_v55  ;;  %v1714_v0 = vadd.f32 -1.4531521, %v1711_v47  ;;  %v2288_v32 = vpop.eup %2287 }
 0xa55   :  { %v1721_v31 = vadd.f32 1.4214138, %v1718_v59 }
 0xa56   :  { %v1719_v2 = vadd.f32 1.4214138, %v1716_v62  ;;  %v1717_v6 = vmul.f32 %v2282_v52, %v1714_v0 }
 0xa57   :  { %v1724_v4 = vmul.f32 %v2278_v61, %v1721_v31 }
 0xa58   :  { %v1722_v54 = vmul.f32 %v2280_v46, %v1719_v2  ;;  %v1720_v8 = vadd.f32 1.4214138, %v1717_v6 }
 0xa59   :  { %v1727_v58 = vadd.f32 -0.28449672, %v1724_v4 }
 0xa5a   :  { %v1725_v9 = vadd.f32 -0.28449672, %v1722_v54  ;;  %v1723_v57 = vmul.f32 %v2282_v52, %v1720_v8 }
 0xa5b   :  { %v1730_v10 = vmul.f32 %v2278_v61, %v1727_v58 }
 0xa5c   :  { %v1728_v45 = vmul.f32 %v2280_v46, %v1725_v9  ;;  %v1726_v60 = vadd.f32 -0.28449672, %v1723_v57 }
 0xa5d   :  { %v1733_v49 = vadd.f32 0.2548296, %v1730_v10 }
 0xa5e   :  { %v1731_v30 = vadd.f32 0.2548296, %v1728_v45  ;;  %v1729_v41 = vmul.f32 %v2282_v52, %v1726_v60 }
 0xa5f   :  { %v1736_v50 = vmul.f32 %v2278_v61, %v1733_v49  ;;  %v1687_v61 = vmul.f32 0.5, %v3274_v36 }
 0xa60   :  { %v1734_v16 = vmul.f32 %v2280_v46, %v1731_v30  ;;  %v1732_v24 = vadd.f32 0.2548296, %v1729_v41 }
 0xa61   :  { %v1751_v7 = vmul.f32 %v2284_v56, %v1736_v50 }
 0xa62   :  { %v1749_v25 = vmul.f32 %v2286_v22, %v1734_v16  ;;  %v1735_v27 = vmul.f32 %v2282_v52, %v1732_v24 }
 0xa63   :  { %v1754_v1 = vsub.f32 1.0, %v1751_v7 }
 0xa64   :  { %v1752_v63 = vsub.f32 1.0, %v1749_v25  ;;  %v1750_v39 = vmul.f32 %v2288_v32, %v1735_v27 }
 0xa65   :  { %v1757_v48 = vmul.f32 %v1754_v1, %v1697_v37 }
 0xa66   :  { %v1755_v40 = vmul.f32 %v1752_v63, %v1695_v19  ;;  %v1753_v11 = vsub.f32 1.0, %v1750_v39 }
 0xa67   :  { %v1760_v43 = vadd.f32 1.0, %v1757_v48 }
 0xa68   :  { %v1758_v14 = vadd.f32 1.0, %v1755_v40  ;;  %v1756_v20 = vmul.f32 %v1753_v11, %v1696_v42 }
 0xa69   :  { %v1763_v15 = vmul.f32 %v1760_v43, %v1688_v17 }
 0xa6a   :  { %v1759_v44 = vadd.f32 1.0, %v1756_v20  ;;  %v1761_v46 = vmul.f32 %v1758_v14, %v1686_v5 }
 0xa6b   :  { %v1765_v51 = vpack.c.bf16 %v1763_v15, %v1763_v15 }
 0xa6c   :  { %v1762_v34 = vmul.f32 %v1759_v44, %v1687_v61 }
 0xa6e   :  { %v1764_v12 = vpack.c.bf16 %v1762_v34, %v1761_v46 }
 0xa70   :  { %2148 = vmatprep.mubr.bf16.mxu1 %v1764_v12 }
 0xa71   :  { %2149 = vmatmul.mubr.bf16.vlgmr.msra.gmra.mrb[32].mxu1 %v1765_v51 }
 0xb44   :  { %v2150_v53 = vpop.f32.mrb[32].mxu1 }
 0xb45   :  { %v1880_v52 = vadd.f32 %v2150_v53, %v1949_v38  ;;  %v1871_v21 = vpop.f32.mrb[33].mxu1 }
 0xb46   :  { %v1872_v55 = vadd.f32 %v1949_v38, %v1871_v21  ;;  %v2151_v23 = vpop.f32.mrb[34].mxu1 }
 0xb47   :  { %v1887_v26 = vadd.f32 %v1880_v52, %v3246_v33  ;;  %v1874_v59 = vpop.f32.mrb[35].mxu1 }
 0xb48   :  { %v1885_v28 = vadd.f32 %v1872_v55, %v3244_v29  ;;  %v1875_v36 = vadd.f32 %v1949_v38, %v1874_v59 }
 0xb49   :  { %1890 = vst.msk [vmem:[#allocation24 + $0x10] sm:$0x3f] %vm218_vm1, %v1887_v26 }
 0xb4a   :  { %1888 = vst.msk [vmem:[#allocation24] sm:$0xff] %vm211_vm0, %v1885_v28  ;;  %v1886_v18 = vadd.f32 %v1875_v36, %v3248_v35 }
 0xb4c   :  { %1889 = vst.msk [vmem:[#allocation24 + $0x8] sm:$0xff] %vm211_vm0, %v1886_v18 }
 0xb4d   :  { %2589 = shalt.err (!%p2586_p10)
}
 0xb4e   :  { %s2590_s3 = scalar_lea.hbm %s3322_s13, 384 }
 0xb4f   :  { %p2591_p11 = scmp.ne.s32.totalorder %s3322_s13, %s2590_s3  ;;  %p2594_p12 = scmp.lt.u32.totalorder %s2590_s3, %s3322_s13 }
 0xb51   :  { %p2596_p13 = pnand %p2594_p12, %p2591_p11 }
 0xb53   :  { %2599 = shalt.err (!%p2596_p13)
}
 0xb54   :  { %1902 = dma.vmem_to_hbm [thread:$0]  %s1897_s8, 384, %s3322_s13, [#allocation5], %s2625_s11, %s2625_s11, %s2626_s26  }
 0xb55   :  { %2614 = dma.done.wait [#allocation5], 384  }
 0xb56   :  { %2615 = vsyncadd [#allocation5], 4294966912 }
 0xb57   :  { %1906 = vsyncpa [#allocation4], 1 }
 0xb58   :  { %1907 = vsyncpa [#allocation7], 1 }
 0xb59   :  { %1908 = vsyncpa [#allocation10], 1 }
 0xb5a   :  { %1909 = vsyncpa [#allocation13], 1 }
 0xb5b   :  { %1910 = vsyncpa [#allocation16], 1 }
 0xb5c   :  { %1911 = vsyncpa [#allocation19], 1 }
 0xb5d   :  { %1912 = vsyncpa [#allocation22], 1 }
 0xb5e   :  { %1913 = vsyncpa [#allocation5], 1 }

</bundles_post_ra>
